<compile_context>
chip_gen: v5e
topology: v5e:2x2
jax: 0.10.0
libtpu: 0.0.40
codegen_flags: <defaults>
</compile_context>

<pallas_src>
import math
import jax
import jax.numpy as jnp
from jax.experimental import pallas as pl
from jax.experimental.pallas import tpu as pltpu

# ---------------- configuration (small synthetic BERT) ----------------
B = 2          # batch size
L = 8          # sequence length
H = 32         # hidden size
NH = 2         # attention heads
DH = H // NH   # head dim
F = 64         # feed-forward inner size
V = 32         # vocab size
C = 3          # labels_num
LAYERS = 2     # encoder layers
POOLING = "mean"   # 'mean' | 'max' | 'last' | 'first'
EPS = 1e-6

# Set to jnp.bfloat16 (and store the encoder weights in bf16) on v5e/v6e/v7x at
# real BERT sizes; accumulation stays f32 via preferred_element_type.  f32 here
# so the toy-size reference check is exact.
MATMUL_DTYPE = jnp.float32


# ---------------- small math helpers (used in kernel and reference) ----------------
def _gelu(x):
    c = math.sqrt(2.0 / math.pi)
    return 0.5 * x * (1.0 + jnp.tanh(c * (x + 0.044715 * x * x * x)))


def _layernorm(x, g, b):
    mu = jnp.mean(x, axis=-1, keepdims=True)
    var = jnp.mean((x - mu) ** 2, axis=-1, keepdims=True)
    return (x - mu) * jax.lax.rsqrt(var + EPS) * g + b


# ---------------- Pallas kernel: one encoder layer per grid step (+ head at last step) ----------------
def bert_layer_kernel(emb_ref, vm_ref,
                      wqkv_ref, bqkv_ref, wo_ref, bo_ref,
                      ln1g_ref, ln1b_ref, wf1_ref, bf1_ref,
                      wf2_ref, bf2_ref, ln2g_ref, ln2b_ref,
                      w1_ref, b1_ref, w2_ref, b2_ref, label_ref,
                      loss_ref, logits_ref,
                      x_ref, ctx_ref):
    l = pl.program_id(0)

    @pl.when(l == 0)
    def _():
        # load embeddings into the persistent activation slab once
        x_ref[...] = emb_ref[...].reshape(B * L, H)

    x = x_ref[...]                                          # [B*L, H] f32, resident

    # additive attention bias built in-kernel from the int8 visible matrix
    bias = jnp.where(vm_ref[...].astype(jnp.float32) > 0.0, 0.0, -10000.0)   # [B, L, L]

    scale = 1.0 / math.sqrt(DH)
    # ---- fused QKV projection: one [B*L, H] x [H, 3H] matmul ----
    qkv = jnp.dot(x.astype(MATMUL_DTYPE), wqkv_ref[0].astype(MATMUL_DTYPE),
                  preferred_element_type=jnp.float32) + bqkv_ref[0]
    q = (qkv[:, 0:H] * scale).reshape(B, L, H)              # fold 1/sqrt(DH) into q
    k = qkv[:, H:2 * H].reshape(B, L, H)
    v = qkv[:, 2 * H:3 * H].reshape(B, L, H)

    # ---- per-head attention; ctx written into contiguous lane slices of a slab ----
    # TODO(synk): at real NH / L, batch heads on a grid axis and tile KV flash-style.
    for h in range(NH):
        sl = slice(h * DH, (h + 1) * DH)
        s = jnp.einsum("bld,bmd->blm",
                       q[:, :, sl].astype(MATMUL_DTYPE),
                       k[:, :, sl].astype(MATMUL_DTYPE),
                       preferred_element_type=jnp.float32) + bias
        s = s - jnp.max(s, axis=-1, keepdims=True)
        p = jnp.exp(s)
        p = p * pl.reciprocal(jnp.sum(p, axis=-1, keepdims=True), approx=True)
        ctx = jnp.einsum("blm,bmd->bld",
                         p.astype(MATMUL_DTYPE),
                         v[:, :, sl].astype(MATMUL_DTYPE),
                         preferred_element_type=jnp.float32)      # [B, L, DH]
        ctx_ref[:, sl] = ctx.reshape(B * L, DH)

    # ---- ONE full-K output projection over the head slab ----
    attn = jnp.dot(ctx_ref[...].astype(MATMUL_DTYPE), wo_ref[0].astype(MATMUL_DTYPE),
                   preferred_element_type=jnp.float32) + bo_ref[0]
    x = _layernorm(x + attn, ln1g_ref[0], ln1b_ref[0])

    # ---- feed-forward (GELU / LN math in f32) ----
    ff = _gelu(jnp.dot(x.astype(MATMUL_DTYPE), wf1_ref[0].astype(MATMUL_DTYPE),
                       preferred_element_type=jnp.float32) + bf1_ref[0])
    ff = jnp.dot(ff.astype(MATMUL_DTYPE), wf2_ref[0].astype(MATMUL_DTYPE),
                 preferred_element_type=jnp.float32) + bf2_ref[0]
    x = _layernorm(x + ff, ln2g_ref[0], ln2b_ref[0])
    x_ref[...] = x                                           # persist for next layer

    # ---- classifier head + loss, only at the last grid step ----
    @pl.when(l == LAYERS - 1)
    def _():
        enc = x.reshape(B, L, H)
        if POOLING == "mean":
            pooled = jnp.mean(enc, axis=1)
        elif POOLING == "max":
            pooled = jnp.max(enc, axis=1)
        elif POOLING == "last":
            pooled = enc[:, L - 1, :]
        else:
            pooled = enc[:, 0, :]

        hid = jnp.tanh(jnp.dot(pooled.astype(MATMUL_DTYPE), w1_ref[...].astype(MATMUL_DTYPE),
                               preferred_element_type=jnp.float32) + b1_ref[...])
        logits = jnp.dot(hid.astype(MATMUL_DTYPE), w2_ref[...].astype(MATMUL_DTYPE),
                         preferred_element_type=jnp.float32) + b2_ref[...]    # [B, C]

        # LogSoftmax + NLLLoss(mean); one vectorized compare builds the one-hot
        m = jnp.max(logits, axis=-1, keepdims=True)
        lse = m + jnp.log(jnp.sum(jnp.exp(logits - m), axis=-1, keepdims=True))
        logp = logits - lse
        iota = jax.lax.broadcasted_iota(jnp.int32, (B, C), 1)
        onehot = (iota == label_ref[...]).astype(jnp.float32)                # [B, C]
        per_example = -jnp.sum(onehot * logp, axis=-1, keepdims=True)        # [B, 1]
        loss_ref[...] = jnp.sum(per_example, axis=0, keepdims=True) * (1.0 / B)
        # TODO(synk): if C grows beyond a handful, pad logits to a lane-dense (128) slab.
        logits_ref[...] = logits


def bert_fused_forward(params, emb, vm_i8, label):
    def per_layer(shape):
        return pl.BlockSpec((1,) + shape, lambda l: (l, 0, 0))

    def resident3(shape):
        return pl.BlockSpec(shape, lambda l: (0, 0, 0))

    def resident2(shape):
        return pl.BlockSpec(shape, lambda l: (0, 0))

    in_specs = [
        resident3((B, L, H)),        # emb
        resident3((B, L, L)),        # vm (int8)
        per_layer((H, 3 * H)),       # wqkv
        per_layer((1, 3 * H)),       # bqkv
        per_layer((H, H)),           # wo
        per_layer((1, H)),           # bo
        per_layer((1, H)),           # ln1g
        per_layer((1, H)),           # ln1b
        per_layer((H, F)),           # wf1
        per_layer((1, F)),           # bf1
        per_layer((F, H)),           # wf2
        per_layer((1, H)),           # bf2
        per_layer((1, H)),           # ln2g
        per_layer((1, H)),           # ln2b
        resident2((H, H)),           # w1
        resident2((1, H)),           # b1
        resident2((H, C)),           # w2
        resident2((1, C)),           # b2
        resident2((B, 1)),           # label column (int32)
    ]
    out_specs = [
        pl.BlockSpec((1, 1), lambda l: (0, 0)),     # loss
        pl.BlockSpec((B, C), lambda l: (0, 0)),     # logits
    ]

    return pl.pallas_call(
        bert_layer_kernel,
        out_shape=(jax.ShapeDtypeStruct((1, 1), jnp.float32),
                   jax.ShapeDtypeStruct((B, C), jnp.float32)),
        grid_spec=pltpu.PrefetchScalarGridSpec(
            num_scalar_prefetch=0,
            grid=(LAYERS,),
            in_specs=in_specs,
            out_specs=out_specs,
            scratch_shapes=[
                pltpu.VMEM((B * L, H), jnp.float32),   # persistent activations
                pltpu.VMEM((B * L, H), jnp.float32),   # per-head context slab
            ]),
        compiler_params=pltpu.CompilerParams(
            dimension_semantics=("arbitrary",),
            # budgeted to fit v7x's 64 MiB physical VMEM with headroom
            vmem_limit_bytes=48 * 1024 * 1024),
    )(emb, vm_i8,
      params["wqkv"], params["bqkv"], params["wo"], params["bo"],
      params["ln1g"], params["ln1b"], params["wf1"], params["bf1"],
      params["wf2"], params["bf2"], params["ln2g"], params["ln2b"],
      params["w1"], params["b1"], params["w2"], params["b2"],
      label.astype(jnp.int32).reshape(B, 1))


# ---------------- parameter init (deterministic, synthetic) ----------------
def init_params(key):
    keys = jax.random.split(key, 64)
    it = iter(keys)

    def nrm(shape):
        return 0.02 * jax.random.normal(next(it), shape, jnp.float32)

    return {
        "word_emb": nrm((V, H)),
        "pos_emb": nrm((64, H)),
        "seg_emb": nrm((3, H)),
        "emb_g": jnp.ones((H,), jnp.float32),
        "emb_b": jnp.zeros((H,), jnp.float32),
        # stacked encoder-layer weights; QKV fused along the output dim
        "wqkv": nrm((LAYERS, H, 3 * H)),
        "bqkv": jnp.zeros((LAYERS, 1, 3 * H), jnp.float32),
        "wo":   nrm((LAYERS, H, H)),
        "bo":   jnp.zeros((LAYERS, 1, H), jnp.float32),
        "ln1g": jnp.ones((LAYERS, 1, H), jnp.float32),
        "ln1b": jnp.zeros((LAYERS, 1, H), jnp.float32),
        "wf1":  nrm((LAYERS, H, F)),
        "bf1":  jnp.zeros((LAYERS, 1, F), jnp.float32),
        "wf2":  nrm((LAYERS, F, H)),
        "bf2":  jnp.zeros((LAYERS, 1, H), jnp.float32),
        "ln2g": jnp.ones((LAYERS, 1, H), jnp.float32),
        "ln2b": jnp.zeros((LAYERS, 1, H), jnp.float32),
        # classifier head: output_layer_1 [H,H], output_layer_2 [H,C]
        "w1": nrm((H, H)), "b1": jnp.zeros((1, H), jnp.float32),
        "w2": nrm((H, C)), "b2": jnp.zeros((1, C), jnp.float32),
    }


# ---------------- full forward (embedding glue + layer-pipelined Pallas kernel) ----------------
def bert_classifier_forward(params, src, label, mask, pos, vm):
    # TODO(synk): embedding-table gathers (word/pos/segment) kept in plain JAX glue.
    emb = params["word_emb"][src] + params["pos_emb"][pos] + params["seg_emb"][mask]
    mu = jnp.mean(emb, axis=-1, keepdims=True)
    var = jnp.mean((emb - mu) ** 2, axis=-1, keepdims=True)
    emb = (emb - mu) * jax.lax.rsqrt(var + EPS) * params["emb_g"] + params["emb_b"]

    # use_vm=True (K-BERT): visible matrix shipped as int8, bias built in-kernel
    vm_i8 = (vm > 0).astype(jnp.int8)

    loss, logits = bert_fused_forward(params, emb.astype(jnp.float32), vm_i8, label)
    return loss[0, 0], logits


# ---------------- pure-JAX reference (for correctness check) ----------------
def ref_forward(params, src, label, mask, pos, vm):
    emb = params["word_emb"][src] + params["pos_emb"][pos] + params["seg_emb"][mask]
    mu = jnp.mean(emb, axis=-1, keepdims=True)
    var = jnp.mean((emb - mu) ** 2, axis=-1, keepdims=True)
    x = (emb - mu) * jax.lax.rsqrt(var + EPS) * params["emb_g"] + params["emb_b"]
    bias = jnp.where(vm > 0, 0.0, -10000.0).astype(jnp.float32)
    scale = 1.0 / math.sqrt(DH)

    for l in range(LAYERS):
        qkv = x @ params["wqkv"][l] + params["bqkv"][l]
        q, k, v = qkv[..., :H], qkv[..., H:2 * H], qkv[..., 2 * H:]
        heads = []
        for h in range(NH):
            sl = slice(h * DH, (h + 1) * DH)
            s = jnp.einsum("bld,bmd->blm", q[..., sl], k[..., sl]) * scale + bias
            p = jax.nn.softmax(s, axis=-1)
            heads.append(jnp.einsum("blm,bmd->bld", p, v[..., sl]))
        ctx = jnp.concatenate(heads, axis=-1)
        attn = ctx @ params["wo"][l] + params["bo"][l]
        x1 = _layernorm(x + attn, params["ln1g"][l], params["ln1b"][l])
        ff = _gelu(x1 @ params["wf1"][l] + params["bf1"][l]) @ params["wf2"][l] + params["bf2"][l]
        x = _layernorm(x1 + ff, params["ln2g"][l], params["ln2b"][l])

    if POOLING == "mean":
        pooled = jnp.mean(x, axis=1)
    elif POOLING == "max":
        pooled = jnp.max(x, axis=1)
    elif POOLING == "last":
        pooled = x[:, -1, :]
    else:
        pooled = x[:, 0, :]
    hid = jnp.tanh(pooled @ params["w1"] + params["b1"])
    logits = hid @ params["w2"] + params["b2"]
    logp = jax.nn.log_softmax(logits, axis=-1)
    loss = -jnp.mean(logp[jnp.arange(B), label])
    return loss, logits


# ---------------- main ----------------
if __name__ == "__main__":
    key = jax.random.PRNGKey(0)
    kp, k1, k2, k3 = jax.random.split(key, 4)
    params = init_params(kp)

    src = jax.random.randint(k1, (B, L), 0, V, dtype=jnp.int32)
    pos = jnp.broadcast_to(jnp.arange(L, dtype=jnp.int32), (B, L))
    mask = jnp.ones((B, L), jnp.int32)
    vm = (jax.random.uniform(k2, (B, L, L)) > 0.3).astype(jnp.int32)
    vm = jnp.maximum(vm, jnp.eye(L, dtype=jnp.int32)[None])     # self always visible
    label = jax.random.randint(k3, (B,), 0, C, dtype=jnp.int32)

    loss, logits = bert_classifier_forward(params, src, label, mask, pos, vm)
    jax.block_until_ready((loss, logits))

    ref_loss, ref_logits = ref_forward(params, src, label, mask, pos, vm)
    assert jnp.allclose(logits, ref_logits, rtol=2e-3, atol=2e-3), "logits mismatch"
    assert jnp.allclose(loss, ref_loss, rtol=2e-3, atol=2e-3), "loss mismatch"

    print("KERNEL_OK")
</pallas_src>

<mosaic_0001>
module attributes {stable_mosaic.version = 11 : i64} {
  func.func @bert_layer_kernel(%arg0: i32, %arg1: memref<2x8x32xf32, #tpu.memory_space<vmem>>, %arg2: memref<2x8x8xi8, #tpu.memory_space<vmem>>, %arg3: memref<1x32x96xf32, #tpu.memory_space<vmem>>, %arg4: memref<1x1x96xf32, #tpu.memory_space<vmem>>, %arg5: memref<1x32x32xf32, #tpu.memory_space<vmem>>, %arg6: memref<1x1x32xf32, #tpu.memory_space<vmem>>, %arg7: memref<1x1x32xf32, #tpu.memory_space<vmem>>, %arg8: memref<1x1x32xf32, #tpu.memory_space<vmem>>, %arg9: memref<1x32x64xf32, #tpu.memory_space<vmem>>, %arg10: memref<1x1x64xf32, #tpu.memory_space<vmem>>, %arg11: memref<1x64x32xf32, #tpu.memory_space<vmem>>, %arg12: memref<1x1x32xf32, #tpu.memory_space<vmem>>, %arg13: memref<1x1x32xf32, #tpu.memory_space<vmem>>, %arg14: memref<1x1x32xf32, #tpu.memory_space<vmem>>, %arg15: memref<32x32xf32, #tpu.memory_space<vmem>>, %arg16: memref<1x32xf32, #tpu.memory_space<vmem>>, %arg17: memref<32x3xf32, #tpu.memory_space<vmem>>, %arg18: memref<1x3xf32, #tpu.memory_space<vmem>>, %arg19: memref<2x1xi32, #tpu.memory_space<vmem>>, %arg20: memref<1x1xf32, #tpu.memory_space<vmem>>, %arg21: memref<2x3xf32, #tpu.memory_space<vmem>>, %arg22: memref<16x32xf32, #tpu.memory_space<vmem>>, %arg23: memref<16x32xf32, #tpu.memory_space<vmem>>) attributes {dimension_semantics = [#tpu.dimension_semantics<arbitrary>], iteration_bounds = array<i64: 2>, scalar_prefetch = 0 : i64, scratch_operands = 2 : i64, tpu.core_type = #tpu.core_type<tc>, window_params = [{pipeline_mode = #tpu.pipeline_mode<synchronous>, transform_indices = @transform_0, window_bounds = array<i64: 2, 8, 32>}, {pipeline_mode = #tpu.pipeline_mode<synchronous>, transform_indices = @transform_1, window_bounds = array<i64: 2, 8, 8>}, {transform_indices = @transform_2, window_bounds = array<i64: 1, 32, 96>}, {transform_indices = @transform_3, window_bounds = array<i64: 1, 1, 96>}, {transform_indices = @transform_4, window_bounds = array<i64: 1, 32, 32>}, {transform_indices = @transform_5, window_bounds = array<i64: 1, 1, 32>}, {transform_indices = @transform_6, window_bounds = array<i64: 1, 1, 32>}, {transform_indices = @transform_7, window_bounds = array<i64: 1, 1, 32>}, {transform_indices = @transform_8, window_bounds = array<i64: 1, 32, 64>}, {transform_indices = @transform_9, window_bounds = array<i64: 1, 1, 64>}, {transform_indices = @transform_10, window_bounds = array<i64: 1, 64, 32>}, {transform_indices = @transform_11, window_bounds = array<i64: 1, 1, 32>}, {transform_indices = @transform_12, window_bounds = array<i64: 1, 1, 32>}, {transform_indices = @transform_13, window_bounds = array<i64: 1, 1, 32>}, {pipeline_mode = #tpu.pipeline_mode<synchronous>, transform_indices = @transform_14, window_bounds = array<i64: 32, 32>}, {pipeline_mode = #tpu.pipeline_mode<synchronous>, transform_indices = @transform_15, window_bounds = array<i64: 1, 32>}, {pipeline_mode = #tpu.pipeline_mode<synchronous>, transform_indices = @transform_16, window_bounds = array<i64: 32, 3>}, {pipeline_mode = #tpu.pipeline_mode<synchronous>, transform_indices = @transform_17, window_bounds = array<i64: 1, 3>}, {pipeline_mode = #tpu.pipeline_mode<synchronous>, transform_indices = @transform_18, window_bounds = array<i64: 2, 1>}, {pipeline_mode = #tpu.pipeline_mode<synchronous>, transform_indices = @transform_19, window_bounds = array<i64: 1, 1>}, {pipeline_mode = #tpu.pipeline_mode<synchronous>, transform_indices = @transform_20, window_bounds = array<i64: 2, 3>}]} {
    %c0_i32 = arith.constant 0 : i32
    %0 = arith.cmpi eq, %arg0, %c0_i32 : i32
    %1 = arith.extui %0 : i1 to i32
    %c0_i32_0 = arith.constant 0 : i32
    %2 = arith.cmpi ne, %1, %c0_i32_0 : i32
    scf.if %2 {
      %c0_78 = arith.constant 0 : index
      %c0_79 = arith.constant 0 : index
      %c0_80 = arith.constant 0 : index
      %155 = vector.load %arg1[%c0_78, %c0_79, %c0_80] : memref<2x8x32xf32, #tpu.memory_space<vmem>>, vector<2x8x32xf32>
      %156 = vector.shape_cast %155 : vector<2x8x32xf32> to vector<16x32xf32>
      %c0_81 = arith.constant 0 : index
      %c0_82 = arith.constant 0 : index
      %157 = vector.load %arg22[%c0_81, %c0_82] : memref<16x32xf32, #tpu.memory_space<vmem>>, vector<16x32xf32>
      tpu.vector_store %arg22[%c0_81, %c0_82], %156 {strides = array<i32>} : memref<16x32xf32, #tpu.memory_space<vmem>>, vector<16x32xf32>,
    } else {
    }
    %c0 = arith.constant 0 : index
    %c0_1 = arith.constant 0 : index
    %3 = vector.load %arg22[%c0, %c0_1] : memref<16x32xf32, #tpu.memory_space<vmem>>, vector<16x32xf32>
    %c0_2 = arith.constant 0 : index
    %c0_3 = arith.constant 0 : index
    %c0_4 = arith.constant 0 : index
    %4 = vector.load %arg2[%c0_2, %c0_3, %c0_4] : memref<2x8x8xi8, #tpu.memory_space<vmem>>, vector<2x8x8xi8>
    %5 = arith.sitofp %4 : vector<2x8x8xi8> to vector<2x8x8xf32>
    %cst = arith.constant 0.000000e+00 : f32
    %6 = vector.broadcast %cst : f32 to vector<2x8x8xf32>
    %7 = arith.cmpf ogt, %5, %6 : vector<2x8x8xf32>
    %cst_5 = arith.constant 0.000000e+00 : f32
    %cst_6 = arith.constant -1.000000e+04 : f32
    %8 = vector.broadcast %cst_5 : f32 to vector<2x8x8xf32>
    %9 = vector.broadcast %cst_6 : f32 to vector<2x8x8xf32>
    %10 = arith.select %7, %8, %9 : vector<2x8x8xi1>, vector<2x8x8xf32>
    %c0_7 = arith.constant 0 : index
    %c0_8 = arith.constant 0 : index
    %c0_9 = arith.constant 0 : index
    %11 = vector.load %arg3[%c0_7, %c0_8, %c0_9] : memref<1x32x96xf32, #tpu.memory_space<vmem>>, vector<1x32x96xf32>
    %12 = vector.shape_cast %11 : vector<1x32x96xf32> to vector<32x96xf32>
    %cst_10 = arith.constant dense<0.000000e+00> : vector<16x96xf32>
    %13 = tpu.matmul %3, %12, %cst_10 {dimension_numbers = #tpu.dot_dimension_numbers<[1], [0], [0], [1], [0, 0, 1, 1], [], []>} : vector<16x32xf32>, vector<32x96xf32>, vector<16x96xf32> -> vector<16x96xf32>
    %c0_11 = arith.constant 0 : index
    %c0_12 = arith.constant 0 : index
    %c0_13 = arith.constant 0 : index
    %14 = vector.load %arg4[%c0_11, %c0_12, %c0_13] : memref<1x1x96xf32, #tpu.memory_space<vmem>>, vector<1x1x96xf32>
    %15 = vector.shape_cast %14 : vector<1x1x96xf32> to vector<1x96xf32>
    %16 = vector.broadcast %15 : vector<1x96xf32> to vector<16x96xf32>
    %17 = arith.addf %13, %16 : vector<16x96xf32>
    %18 = vector.extract_strided_slice %17 {offsets = [0, 0], sizes = [16, 32], strides = [1, 1]} : vector<16x96xf32> to vector<16x32xf32>
    %cst_14 = arith.constant 2.500000e-01 : f32
    %19 = vector.broadcast %cst_14 : f32 to vector<16x32xf32>
    %20 = arith.mulf %18, %19 : vector<16x32xf32>
    %21 = vector.shape_cast %20 : vector<16x32xf32> to vector<2x8x32xf32>
    %22 = vector.extract_strided_slice %17 {offsets = [0, 32], sizes = [16, 32], strides = [1, 1]} : vector<16x96xf32> to vector<16x32xf32>
    %23 = vector.shape_cast %22 : vector<16x32xf32> to vector<2x8x32xf32>
    %24 = vector.extract_strided_slice %17 {offsets = [0, 64], sizes = [16, 32], strides = [1, 1]} : vector<16x96xf32> to vector<16x32xf32>
    %25 = vector.shape_cast %24 : vector<16x32xf32> to vector<2x8x32xf32>
    %26 = vector.extract_strided_slice %21 {offsets = [0, 0, 0], sizes = [2, 8, 16], strides = [1, 1, 1]} : vector<2x8x32xf32> to vector<2x8x16xf32>
    %27 = vector.extract_strided_slice %23 {offsets = [0, 0, 0], sizes = [2, 8, 16], strides = [1, 1, 1]} : vector<2x8x32xf32> to vector<2x8x16xf32>
    "tpu.trace_start"() <{level = 10 : i32, message = "bld,bmd->blm"}> : () -> ()
    %cst_15 = arith.constant dense<0.000000e+00> : vector<2x8x8xf32>
    %28 = tpu.matmul %26, %27, %cst_15 {dimension_numbers = #tpu.dot_dimension_numbers<[2], [2], [1], [1], [0, 0, 0, 1, 1, 1], [0], [0]>} : vector<2x8x16xf32>, vector<2x8x16xf32>, vector<2x8x8xf32> -> vector<2x8x8xf32>
    "tpu.trace_stop"() : () -> ()
    %29 = arith.addf %28, %10 : vector<2x8x8xf32>
    %cst_16 = arith.constant dense<0xFF800000> : vector<2x8xf32>
    %30 = vector.multi_reduction <maximumf>, %29, %cst_16 [2] : vector<2x8x8xf32> to vector<2x8xf32>
    %31 = vector.shape_cast %30 : vector<2x8xf32> to vector<2x8x1xf32>
    %32 = vector.broadcast %31 : vector<2x8x1xf32> to vector<2x8x8xf32>
    %33 = arith.subf %29, %32 : vector<2x8x8xf32>
    %34 = math.exp %33 : vector<2x8x8xf32>
    %cst_17 = arith.constant dense<0.000000e+00> : vector<2x8xf32>
    %35 = vector.multi_reduction <add>, %34, %cst_17 [2] : vector<2x8x8xf32> to vector<2x8xf32>
    %36 = vector.shape_cast %35 : vector<2x8xf32> to vector<2x8x1xf32>
    %37 = tpu.reciprocal %36 {approx = true} : vector<2x8x1xf32> -> vector<2x8x1xf32>
    %38 = vector.broadcast %37 : vector<2x8x1xf32> to vector<2x8x8xf32>
    %39 = arith.mulf %34, %38 : vector<2x8x8xf32>
    %40 = vector.extract_strided_slice %25 {offsets = [0, 0, 0], sizes = [2, 8, 16], strides = [1, 1, 1]} : vector<2x8x32xf32> to vector<2x8x16xf32>
    "tpu.trace_start"() <{level = 10 : i32, message = "blm,bmd->bld"}> : () -> ()
    %cst_18 = arith.constant dense<0.000000e+00> : vector<2x8x16xf32>
    %41 = tpu.matmul %39, %40, %cst_18 {dimension_numbers = #tpu.dot_dimension_numbers<[2], [1], [1], [2], [0, 0, 0, 1, 1, 2], [0], [0]>} : vector<2x8x8xf32>, vector<2x8x16xf32>, vector<2x8x16xf32> -> vector<2x8x16xf32>
    "tpu.trace_stop"() : () -> ()
    %42 = vector.shape_cast %41 : vector<2x8x16xf32> to vector<16x16xf32>
    %c0_19 = arith.constant 0 : index
    %c0_20 = arith.constant 0 : index
    %43 = vector.load %arg23[%c0_19, %c0_20] : memref<16x32xf32, #tpu.memory_space<vmem>>, vector<16x16xf32>
    tpu.vector_store %arg23[%c0_19, %c0_20], %42 {strides = array<i32>} : memref<16x32xf32, #tpu.memory_space<vmem>>, vector<16x16xf32>,
    %44 = vector.extract_strided_slice %21 {offsets = [0, 0, 16], sizes = [2, 8, 16], strides = [1, 1, 1]} : vector<2x8x32xf32> to vector<2x8x16xf32>
    %45 = vector.extract_strided_slice %23 {offsets = [0, 0, 16], sizes = [2, 8, 16], strides = [1, 1, 1]} : vector<2x8x32xf32> to vector<2x8x16xf32>
    "tpu.trace_start"() <{level = 10 : i32, message = "bld,bmd->blm"}> : () -> ()
    %cst_21 = arith.constant dense<0.000000e+00> : vector<2x8x8xf32>
    %46 = tpu.matmul %44, %45, %cst_21 {dimension_numbers = #tpu.dot_dimension_numbers<[2], [2], [1], [1], [0, 0, 0, 1, 1, 1], [0], [0]>} : vector<2x8x16xf32>, vector<2x8x16xf32>, vector<2x8x8xf32> -> vector<2x8x8xf32>
    "tpu.trace_stop"() : () -> ()
    %47 = arith.addf %46, %10 : vector<2x8x8xf32>
    %cst_22 = arith.constant dense<0xFF800000> : vector<2x8xf32>
    %48 = vector.multi_reduction <maximumf>, %47, %cst_22 [2] : vector<2x8x8xf32> to vector<2x8xf32>
    %49 = vector.shape_cast %48 : vector<2x8xf32> to vector<2x8x1xf32>
    %50 = vector.broadcast %49 : vector<2x8x1xf32> to vector<2x8x8xf32>
    %51 = arith.subf %47, %50 : vector<2x8x8xf32>
    %52 = math.exp %51 : vector<2x8x8xf32>
    %cst_23 = arith.constant dense<0.000000e+00> : vector<2x8xf32>
    %53 = vector.multi_reduction <add>, %52, %cst_23 [2] : vector<2x8x8xf32> to vector<2x8xf32>
    %54 = vector.shape_cast %53 : vector<2x8xf32> to vector<2x8x1xf32>
    %55 = tpu.reciprocal %54 {approx = true} : vector<2x8x1xf32> -> vector<2x8x1xf32>
    %56 = vector.broadcast %55 : vector<2x8x1xf32> to vector<2x8x8xf32>
    %57 = arith.mulf %52, %56 : vector<2x8x8xf32>
    %58 = vector.extract_strided_slice %25 {offsets = [0, 0, 16], sizes = [2, 8, 16], strides = [1, 1, 1]} : vector<2x8x32xf32> to vector<2x8x16xf32>
    "tpu.trace_start"() <{level = 10 : i32, message = "blm,bmd->bld"}> : () -> ()
    %cst_24 = arith.constant dense<0.000000e+00> : vector<2x8x16xf32>
    %59 = tpu.matmul %57, %58, %cst_24 {dimension_numbers = #tpu.dot_dimension_numbers<[2], [1], [1], [2], [0, 0, 0, 1, 1, 2], [0], [0]>} : vector<2x8x8xf32>, vector<2x8x16xf32>, vector<2x8x16xf32> -> vector<2x8x16xf32>
    "tpu.trace_stop"() : () -> ()
    %60 = vector.shape_cast %59 : vector<2x8x16xf32> to vector<16x16xf32>
    %c0_25 = arith.constant 0 : index
    %c16 = arith.constant 16 : index
    %61 = vector.load %arg23[%c0_25, %c16] : memref<16x32xf32, #tpu.memory_space<vmem>>, vector<16x16xf32>
    tpu.vector_store %arg23[%c0_25, %c16], %60 {strides = array<i32>} : memref<16x32xf32, #tpu.memory_space<vmem>>, vector<16x16xf32>,
    %c0_26 = arith.constant 0 : index
    %c0_27 = arith.constant 0 : index
    %62 = vector.load %arg23[%c0_26, %c0_27] : memref<16x32xf32, #tpu.memory_space<vmem>>, vector<16x32xf32>
    %c0_28 = arith.constant 0 : index
    %c0_29 = arith.constant 0 : index
    %c0_30 = arith.constant 0 : index
    %63 = vector.load %arg5[%c0_28, %c0_29, %c0_30] : memref<1x32x32xf32, #tpu.memory_space<vmem>>, vector<1x32x32xf32>
    %64 = vector.shape_cast %63 : vector<1x32x32xf32> to vector<32x32xf32>
    %cst_31 = arith.constant dense<0.000000e+00> : vector<16x32xf32>
    %65 = tpu.matmul %62, %64, %cst_31 {dimension_numbers = #tpu.dot_dimension_numbers<[1], [0], [0], [1], [0, 0, 1, 1], [], []>} : vector<16x32xf32>, vector<32x32xf32>, vector<16x32xf32> -> vector<16x32xf32>
    %c0_32 = arith.constant 0 : index
    %c0_33 = arith.constant 0 : index
    %c0_34 = arith.constant 0 : index
    %66 = vector.load %arg6[%c0_32, %c0_33, %c0_34] : memref<1x1x32xf32, #tpu.memory_space<vmem>>, vector<1x1x32xf32>
    %67 = vector.shape_cast %66 : vector<1x1x32xf32> to vector<1x32xf32>
    %68 = vector.broadcast %67 : vector<1x32xf32> to vector<16x32xf32>
    %69 = arith.addf %65, %68 : vector<16x32xf32>
    %70 = arith.addf %3, %69 : vector<16x32xf32>
    %c0_35 = arith.constant 0 : index
    %c0_36 = arith.constant 0 : index
    %c0_37 = arith.constant 0 : index
    %71 = vector.load %arg7[%c0_35, %c0_36, %c0_37] : memref<1x1x32xf32, #tpu.memory_space<vmem>>, vector<1x1x32xf32>
    %72 = vector.shape_cast %71 : vector<1x1x32xf32> to vector<1x32xf32>
    %c0_38 = arith.constant 0 : index
    %c0_39 = arith.constant 0 : index
    %c0_40 = arith.constant 0 : index
    %73 = vector.load %arg8[%c0_38, %c0_39, %c0_40] : memref<1x1x32xf32, #tpu.memory_space<vmem>>, vector<1x1x32xf32>
    %74 = vector.shape_cast %73 : vector<1x1x32xf32> to vector<1x32xf32>
    %cst_41 = arith.constant dense<0.000000e+00> : vector<16xf32>
    %75 = vector.multi_reduction <add>, %70, %cst_41 [1] : vector<16x32xf32> to vector<16xf32>
    %76 = vector.shape_cast %75 : vector<16xf32> to vector<16x1xf32>
    %cst_42 = arith.constant 3.200000e+01 : f32
    %77 = vector.broadcast %cst_42 : f32 to vector<16x1xf32>
    %78 = arith.divf %76, %77 : vector<16x1xf32>
    %79 = vector.broadcast %78 : vector<16x1xf32> to vector<16x32xf32>
    %80 = arith.subf %70, %79 : vector<16x32xf32>
    %81 = arith.mulf %80, %80 : vector<16x32xf32>
    %cst_43 = arith.constant dense<0.000000e+00> : vector<16xf32>
    %82 = vector.multi_reduction <add>, %81, %cst_43 [1] : vector<16x32xf32> to vector<16xf32>
    %83 = vector.shape_cast %82 : vector<16xf32> to vector<16x1xf32>
    %cst_44 = arith.constant 3.200000e+01 : f32
    %84 = vector.broadcast %cst_44 : f32 to vector<16x1xf32>
    %85 = arith.divf %83, %84 : vector<16x1xf32>
    %86 = vector.broadcast %78 : vector<16x1xf32> to vector<16x32xf32>
    %87 = arith.subf %70, %86 : vector<16x32xf32>
    %cst_45 = arith.constant 9.99999997E-7 : f32
    %88 = vector.broadcast %cst_45 : f32 to vector<16x1xf32>
    %89 = arith.addf %85, %88 : vector<16x1xf32>
    %90 = math.rsqrt %89 : vector<16x1xf32>
    %91 = vector.broadcast %90 : vector<16x1xf32> to vector<16x32xf32>
    %92 = arith.mulf %87, %91 : vector<16x32xf32>
    %93 = vector.broadcast %72 : vector<1x32xf32> to vector<16x32xf32>
    %94 = arith.mulf %92, %93 : vector<16x32xf32>
    %95 = vector.broadcast %74 : vector<1x32xf32> to vector<16x32xf32>
    %96 = arith.addf %94, %95 : vector<16x32xf32>
    %c0_46 = arith.constant 0 : index
    %c0_47 = arith.constant 0 : index
    %c0_48 = arith.constant 0 : index
    %97 = vector.load %arg9[%c0_46, %c0_47, %c0_48] : memref<1x32x64xf32, #tpu.memory_space<vmem>>, vector<1x32x64xf32>
    %98 = vector.shape_cast %97 : vector<1x32x64xf32> to vector<32x64xf32>
    %cst_49 = arith.constant dense<0.000000e+00> : vector<16x64xf32>
    %99 = tpu.matmul %96, %98, %cst_49 {dimension_numbers = #tpu.dot_dimension_numbers<[1], [0], [0], [1], [0, 0, 1, 1], [], []>} : vector<16x32xf32>, vector<32x64xf32>, vector<16x64xf32> -> vector<16x64xf32>
    %c0_50 = arith.constant 0 : index
    %c0_51 = arith.constant 0 : index
    %c0_52 = arith.constant 0 : index
    %100 = vector.load %arg10[%c0_50, %c0_51, %c0_52] : memref<1x1x64xf32, #tpu.memory_space<vmem>>, vector<1x1x64xf32>
    %101 = vector.shape_cast %100 : vector<1x1x64xf32> to vector<1x64xf32>
    %102 = vector.broadcast %101 : vector<1x64xf32> to vector<16x64xf32>
    %103 = arith.addf %99, %102 : vector<16x64xf32>
    %cst_53 = arith.constant 5.000000e-01 : f32
    %104 = vector.broadcast %cst_53 : f32 to vector<16x64xf32>
    %105 = arith.mulf %104, %103 : vector<16x64xf32>
    %cst_54 = arith.constant 4.471500e-02 : f32
    %106 = vector.broadcast %cst_54 : f32 to vector<16x64xf32>
    %107 = arith.mulf %106, %103 : vector<16x64xf32>
    %108 = arith.mulf %107, %103 : vector<16x64xf32>
    %109 = arith.mulf %108, %103 : vector<16x64xf32>
    %110 = arith.addf %103, %109 : vector<16x64xf32>
    %cst_55 = arith.constant 0.797884583 : f32
    %111 = vector.broadcast %cst_55 : f32 to vector<16x64xf32>
    %112 = arith.mulf %111, %110 : vector<16x64xf32>
    %113 = math.tanh %112 : vector<16x64xf32>
    %cst_56 = arith.constant 1.000000e+00 : f32
    %114 = vector.broadcast %cst_56 : f32 to vector<16x64xf32>
    %115 = arith.addf %114, %113 : vector<16x64xf32>
    %116 = arith.mulf %105, %115 : vector<16x64xf32>
    %c0_57 = arith.constant 0 : index
    %c0_58 = arith.constant 0 : index
    %c0_59 = arith.constant 0 : index
    %117 = vector.load %arg11[%c0_57, %c0_58, %c0_59] : memref<1x64x32xf32, #tpu.memory_space<vmem>>, vector<1x64x32xf32>
    %118 = vector.shape_cast %117 : vector<1x64x32xf32> to vector<64x32xf32>
    %cst_60 = arith.constant dense<0.000000e+00> : vector<16x32xf32>
    %119 = tpu.matmul %116, %118, %cst_60 {dimension_numbers = #tpu.dot_dimension_numbers<[1], [0], [0], [1], [0, 0, 1, 1], [], []>} : vector<16x64xf32>, vector<64x32xf32>, vector<16x32xf32> -> vector<16x32xf32>
    %c0_61 = arith.constant 0 : index
    %c0_62 = arith.constant 0 : index
    %c0_63 = arith.constant 0 : index
    %120 = vector.load %arg12[%c0_61, %c0_62, %c0_63] : memref<1x1x32xf32, #tpu.memory_space<vmem>>, vector<1x1x32xf32>
    %121 = vector.shape_cast %120 : vector<1x1x32xf32> to vector<1x32xf32>
    %122 = vector.broadcast %121 : vector<1x32xf32> to vector<16x32xf32>
    %123 = arith.addf %119, %122 : vector<16x32xf32>
    %124 = arith.addf %96, %123 : vector<16x32xf32>
    %c0_64 = arith.constant 0 : index
    %c0_65 = arith.constant 0 : index
    %c0_66 = arith.constant 0 : index
    %125 = vector.load %arg13[%c0_64, %c0_65, %c0_66] : memref<1x1x32xf32, #tpu.memory_space<vmem>>, vector<1x1x32xf32>
    %126 = vector.shape_cast %125 : vector<1x1x32xf32> to vector<1x32xf32>
    %c0_67 = arith.constant 0 : index
    %c0_68 = arith.constant 0 : index
    %c0_69 = arith.constant 0 : index
    %127 = vector.load %arg14[%c0_67, %c0_68, %c0_69] : memref<1x1x32xf32, #tpu.memory_space<vmem>>, vector<1x1x32xf32>
    %128 = vector.shape_cast %127 : vector<1x1x32xf32> to vector<1x32xf32>
    %cst_70 = arith.constant dense<0.000000e+00> : vector<16xf32>
    %129 = vector.multi_reduction <add>, %124, %cst_70 [1] : vector<16x32xf32> to vector<16xf32>
    %130 = vector.shape_cast %129 : vector<16xf32> to vector<16x1xf32>
    %cst_71 = arith.constant 3.200000e+01 : f32
    %131 = vector.broadcast %cst_71 : f32 to vector<16x1xf32>
    %132 = arith.divf %130, %131 : vector<16x1xf32>
    %133 = vector.broadcast %132 : vector<16x1xf32> to vector<16x32xf32>
    %134 = arith.subf %124, %133 : vector<16x32xf32>
    %135 = arith.mulf %134, %134 : vector<16x32xf32>
    %cst_72 = arith.constant dense<0.000000e+00> : vector<16xf32>
    %136 = vector.multi_reduction <add>, %135, %cst_72 [1] : vector<16x32xf32> to vector<16xf32>
    %137 = vector.shape_cast %136 : vector<16xf32> to vector<16x1xf32>
    %cst_73 = arith.constant 3.200000e+01 : f32
    %138 = vector.broadcast %cst_73 : f32 to vector<16x1xf32>
    %139 = arith.divf %137, %138 : vector<16x1xf32>
    %140 = vector.broadcast %132 : vector<16x1xf32> to vector<16x32xf32>
    %141 = arith.subf %124, %140 : vector<16x32xf32>
    %cst_74 = arith.constant 9.99999997E-7 : f32
    %142 = vector.broadcast %cst_74 : f32 to vector<16x1xf32>
    %143 = arith.addf %139, %142 : vector<16x1xf32>
    %144 = math.rsqrt %143 : vector<16x1xf32>
    %145 = vector.broadcast %144 : vector<16x1xf32> to vector<16x32xf32>
    %146 = arith.mulf %141, %145 : vector<16x32xf32>
    %147 = vector.broadcast %126 : vector<1x32xf32> to vector<16x32xf32>
    %148 = arith.mulf %146, %147 : vector<16x32xf32>
    %149 = vector.broadcast %128 : vector<1x32xf32> to vector<16x32xf32>
    %150 = arith.addf %148, %149 : vector<16x32xf32>
    %c0_75 = arith.constant 0 : index
    %c0_76 = arith.constant 0 : index
    %151 = vector.load %arg22[%c0_75, %c0_76] : memref<16x32xf32, #tpu.memory_space<vmem>>, vector<16x32xf32>
    tpu.vector_store %arg22[%c0_75, %c0_76], %150 {strides = array<i32>} : memref<16x32xf32, #tpu.memory_space<vmem>>, vector<16x32xf32>,
    %c1_i32 = arith.constant 1 : i32
    %152 = arith.cmpi eq, %arg0, %c1_i32 : i32
    %153 = arith.extui %152 : i1 to i32
    %c0_i32_77 = arith.constant 0 : i32
    %154 = arith.cmpi ne, %153, %c0_i32_77 : i32
    scf.if %154 {
      %155 = vector.shape_cast %150 : vector<16x32xf32> to vector<2x8x32xf32>
      %cst_78 = arith.constant dense<0.000000e+00> : vector<2x32xf32>
      %156 = vector.multi_reduction <add>, %155, %cst_78 [1] : vector<2x8x32xf32> to vector<2x32xf32>
      %cst_79 = arith.constant 8.000000e+00 : f32
      %157 = vector.broadcast %cst_79 : f32 to vector<2x32xf32>
      %158 = arith.divf %156, %157 : vector<2x32xf32>
      %c0_80 = arith.constant 0 : index
      %c0_81 = arith.constant 0 : index
      %159 = vector.load %arg15[%c0_80, %c0_81] : memref<32x32xf32, #tpu.memory_space<vmem>>, vector<32x32xf32>
      %cst_82 = arith.constant dense<0.000000e+00> : vector<2x32xf32>
      %160 = tpu.matmul %158, %159, %cst_82 {dimension_numbers = #tpu.dot_dimension_numbers<[1], [0], [0], [1], [0, 0, 1, 1], [], []>} : vector<2x32xf32>, vector<32x32xf32>, vector<2x32xf32> -> vector<2x32xf32>
      %c0_83 = arith.constant 0 : index
      %c0_84 = arith.constant 0 : index
      %161 = vector.load %arg16[%c0_83, %c0_84] : memref<1x32xf32, #tpu.memory_space<vmem>>, vector<1x32xf32>
      %162 = vector.broadcast %161 : vector<1x32xf32> to vector<2x32xf32>
      %163 = arith.addf %160, %162 : vector<2x32xf32>
      %164 = math.tanh %163 : vector<2x32xf32>
      %c0_85 = arith.constant 0 : index
      %c0_86 = arith.constant 0 : index
      %165 = vector.load %arg17[%c0_85, %c0_86] : memref<32x3xf32, #tpu.memory_space<vmem>>, vector<32x3xf32>
      %cst_87 = arith.constant dense<0.000000e+00> : vector<2x3xf32>
      %166 = tpu.matmul %164, %165, %cst_87 {dimension_numbers = #tpu.dot_dimension_numbers<[1], [0], [0], [1], [0, 0, 1, 1], [], []>} : vector<2x32xf32>, vector<32x3xf32>, vector<2x3xf32> -> vector<2x3xf32>
      %c0_88 = arith.constant 0 : index
      %c0_89 = arith.constant 0 : index
      %167 = vector.load %arg18[%c0_88, %c0_89] : memref<1x3xf32, #tpu.memory_space<vmem>>, vector<1x3xf32>
      %168 = vector.broadcast %167 : vector<1x3xf32> to vector<2x3xf32>
      %169 = arith.addf %166, %168 : vector<2x3xf32>
      %cst_90 = arith.constant dense<0xFF800000> : vector<2xf32>
      %170 = vector.multi_reduction <maximumf>, %169, %cst_90 [1] : vector<2x3xf32> to vector<2xf32>
      %171 = vector.shape_cast %170 : vector<2xf32> to vector<2x1xf32>
      %172 = vector.broadcast %171 : vector<2x1xf32> to vector<2x3xf32>
      %173 = arith.subf %169, %172 : vector<2x3xf32>
      %174 = math.exp %173 : vector<2x3xf32>
      %cst_91 = arith.constant dense<0.000000e+00> : vector<2xf32>
      %175 = vector.multi_reduction <add>, %174, %cst_91 [1] : vector<2x3xf32> to vector<2xf32>
      %176 = vector.shape_cast %175 : vector<2xf32> to vector<2x1xf32>
      %177 = math.log %176 : vector<2x1xf32>
      %178 = arith.addf %171, %177 : vector<2x1xf32>
      %179 = vector.broadcast %178 : vector<2x1xf32> to vector<2x3xf32>
      %180 = arith.subf %169, %179 : vector<2x3xf32>
      %181 = tpu.iota {dimensions = array<i32: 1>} : vector<2x3xi32>
      %c0_92 = arith.constant 0 : index
      %c0_93 = arith.constant 0 : index
      %182 = vector.load %arg19[%c0_92, %c0_93] : memref<2x1xi32, #tpu.memory_space<vmem>>, vector<2x1xi32>
      %183 = vector.broadcast %182 : vector<2x1xi32> to vector<2x3xi32>
      %184 = arith.cmpi eq, %181, %183 : vector<2x3xi32>
      %185 = arith.extui %184 : vector<2x3xi1> to vector<2x3xi32>
      %186 = arith.sitofp %185 : vector<2x3xi32> to vector<2x3xf32>
      %187 = arith.mulf %186, %180 : vector<2x3xf32>
      %cst_94 = arith.constant dense<0.000000e+00> : vector<2xf32>
      %188 = vector.multi_reduction <add>, %187, %cst_94 [1] : vector<2x3xf32> to vector<2xf32>
      %189 = vector.shape_cast %188 : vector<2xf32> to vector<2x1xf32>
      %cst_95 = arith.constant 0.000000e+00 : f32
      %190 = vector.broadcast %cst_95 : f32 to vector<2x1xf32>
      %191 = arith.subf %190, %189 : vector<2x1xf32>
      %cst_96 = arith.constant dense<0.000000e+00> : vector<1xf32>
      %192 = vector.multi_reduction <add>, %191, %cst_96 [0] : vector<2x1xf32> to vector<1xf32>
      %193 = vector.shape_cast %192 : vector<1xf32> to vector<1x1xf32>
      %cst_97 = arith.constant 5.000000e-01 : f32
      %194 = vector.broadcast %cst_97 : f32 to vector<1x1xf32>
      %195 = arith.mulf %193, %194 : vector<1x1xf32>
      %c0_98 = arith.constant 0 : index
      %c0_99 = arith.constant 0 : index
      %196 = vector.load %arg20[%c0_98, %c0_99] : memref<1x1xf32, #tpu.memory_space<vmem>>, vector<1x1xf32>
      tpu.vector_store %arg20[%c0_98, %c0_99], %195 {strides = array<i32>} : memref<1x1xf32, #tpu.memory_space<vmem>>, vector<1x1xf32>,
      %c0_100 = arith.constant 0 : index
      %c0_101 = arith.constant 0 : index
      %197 = vector.load %arg21[%c0_100, %c0_101] : memref<2x3xf32, #tpu.memory_space<vmem>>, vector<2x3xf32>
      tpu.vector_store %arg21[%c0_100, %c0_101], %169 {strides = array<i32>} : memref<2x3xf32, #tpu.memory_space<vmem>>, vector<2x3xf32>,
    } else {
    }
    return
  }
  func.func @transform_0(%arg0: i32) -> (i32, i32, i32) {
    %c0_i32 = arith.constant 0 : i32
    %c0_i32_0 = arith.constant 0 : i32
    %c0_i32_1 = arith.constant 0 : i32
    %c0_i32_2 = arith.constant 0 : i32
    return %c0_i32, %c0_i32_0, %c0_i32_1 : i32, i32, i32
  }
  func.func @transform_1(%arg0: i32) -> (i32, i32, i32) {
    %c0_i32 = arith.constant 0 : i32
    %c0_i32_0 = arith.constant 0 : i32
    %c0_i32_1 = arith.constant 0 : i32
    %c0_i32_2 = arith.constant 0 : i32
    return %c0_i32, %c0_i32_0, %c0_i32_1 : i32, i32, i32
  }
  func.func @transform_2(%arg0: i32) -> (i32, i32, i32) {
    %c0_i32 = arith.constant 0 : i32
    %c0_i32_0 = arith.constant 0 : i32
    %c0_i32_1 = arith.constant 0 : i32
    return %arg0, %c0_i32, %c0_i32_0 : i32, i32, i32
  }
  func.func @transform_3(%arg0: i32) -> (i32, i32, i32) {
    %c0_i32 = arith.constant 0 : i32
    %c0_i32_0 = arith.constant 0 : i32
    %c0_i32_1 = arith.constant 0 : i32
    return %arg0, %c0_i32, %c0_i32_0 : i32, i32, i32
  }
  func.func @transform_4(%arg0: i32) -> (i32, i32, i32) {
    %c0_i32 = arith.constant 0 : i32
    %c0_i32_0 = arith.constant 0 : i32
    %c0_i32_1 = arith.constant 0 : i32
    return %arg0, %c0_i32, %c0_i32_0 : i32, i32, i32
  }
  func.func @transform_5(%arg0: i32) -> (i32, i32, i32) {
    %c0_i32 = arith.constant 0 : i32
    %c0_i32_0 = arith.constant 0 : i32
    %c0_i32_1 = arith.constant 0 : i32
    return %arg0, %c0_i32, %c0_i32_0 : i32, i32, i32
  }
  func.func @transform_6(%arg0: i32) -> (i32, i32, i32) {
    %c0_i32 = arith.constant 0 : i32
    %c0_i32_0 = arith.constant 0 : i32
    %c0_i32_1 = arith.constant 0 : i32
    return %arg0, %c0_i32, %c0_i32_0 : i32, i32, i32
  }
  func.func @transform_7(%arg0: i32) -> (i32, i32, i32) {
    %c0_i32 = arith.constant 0 : i32
    %c0_i32_0 = arith.constant 0 : i32
    %c0_i32_1 = arith.constant 0 : i32
    return %arg0, %c0_i32, %c0_i32_0 : i32, i32, i32
  }
  func.func @transform_8(%arg0: i32) -> (i32, i32, i32) {
    %c0_i32 = arith.constant 0 : i32
    %c0_i32_0 = arith.constant 0 : i32
    %c0_i32_1 = arith.constant 0 : i32
    return %arg0, %c0_i32, %c0_i32_0 : i32, i32, i32
  }
  func.func @transform_9(%arg0: i32) -> (i32, i32, i32) {
    %c0_i32 = arith.constant 0 : i32
    %c0_i32_0 = arith.constant 0 : i32
    %c0_i32_1 = arith.constant 0 : i32
    return %arg0, %c0_i32, %c0_i32_0 : i32, i32, i32
  }
  func.func @transform_10(%arg0: i32) -> (i32, i32, i32) {
    %c0_i32 = arith.constant 0 : i32
    %c0_i32_0 = arith.constant 0 : i32
    %c0_i32_1 = arith.constant 0 : i32
    return %arg0, %c0_i32, %c0_i32_0 : i32, i32, i32
  }
  func.func @transform_11(%arg0: i32) -> (i32, i32, i32) {
    %c0_i32 = arith.constant 0 : i32
    %c0_i32_0 = arith.constant 0 : i32
    %c0_i32_1 = arith.constant 0 : i32
    return %arg0, %c0_i32, %c0_i32_0 : i32, i32, i32
  }
  func.func @transform_12(%arg0: i32) -> (i32, i32, i32) {
    %c0_i32 = arith.constant 0 : i32
    %c0_i32_0 = arith.constant 0 : i32
    %c0_i32_1 = arith.constant 0 : i32
    return %arg0, %c0_i32, %c0_i32_0 : i32, i32, i32
  }
  func.func @transform_13(%arg0: i32) -> (i32, i32, i32) {
    %c0_i32 = arith.constant 0 : i32
    %c0_i32_0 = arith.constant 0 : i32
    %c0_i32_1 = arith.constant 0 : i32
    return %arg0, %c0_i32, %c0_i32_0 : i32, i32, i32
  }
  func.func @transform_14(%arg0: i32) -> (i32, i32) {
    %c0_i32 = arith.constant 0 : i32
    %c0_i32_0 = arith.constant 0 : i32
    %c0_i32_1 = arith.constant 0 : i32
    return %c0_i32, %c0_i32_0 : i32, i32
  }
  func.func @transform_15(%arg0: i32) -> (i32, i32) {
    %c0_i32 = arith.constant 0 : i32
    %c0_i32_0 = arith.constant 0 : i32
    %c0_i32_1 = arith.constant 0 : i32
    return %c0_i32, %c0_i32_0 : i32, i32
  }
  func.func @transform_16(%arg0: i32) -> (i32, i32) {
    %c0_i32 = arith.constant 0 : i32
    %c0_i32_0 = arith.constant 0 : i32
    %c0_i32_1 = arith.constant 0 : i32
    return %c0_i32, %c0_i32_0 : i32, i32
  }
  func.func @transform_17(%arg0: i32) -> (i32, i32) {
    %c0_i32 = arith.constant 0 : i32
    %c0_i32_0 = arith.constant 0 : i32
    %c0_i32_1 = arith.constant 0 : i32
    return %c0_i32, %c0_i32_0 : i32, i32
  }
  func.func @transform_18(%arg0: i32) -> (i32, i32) {
    %c0_i32 = arith.constant 0 : i32
    %c0_i32_0 = arith.constant 0 : i32
    %c0_i32_1 = arith.constant 0 : i32
    return %c0_i32, %c0_i32_0 : i32, i32
  }
  func.func @transform_19(%arg0: i32) -> (i32, i32) {
    %c0_i32 = arith.constant 0 : i32
    %c0_i32_0 = arith.constant 0 : i32
    %c0_i32_1 = arith.constant 0 : i32
    return %c0_i32, %c0_i32_0 : i32, i32
  }
  func.func @transform_20(%arg0: i32) -> (i32, i32) {
    %c0_i32 = arith.constant 0 : i32
    %c0_i32_0 = arith.constant 0 : i32
    %c0_i32_1 = arith.constant 0 : i32
    return %c0_i32, %c0_i32_0 : i32, i32
  }
}

</mosaic_0001>

<bundles_post_ra>
// kernel: tpu_custom_call.1
= control target key start
LH: loop header
LB: loop body
LE: loop exit
PB: predicated region body
PF: predicated region fallthrough
CT: control target
= control target key end

     0   :  { %s2816_s0 = inlined_call_operand.hbm [shape: f32[2,8,32], index: 0, kind: input, shape index: {}]   ;;  %s2817_s1 = inlined_call_operand.vmem [shape: s8[2,8,8], index: 1, kind: input, shape index: {}]   ;;  %s2818_s2 = inlined_call_operand.vmem [shape: f32[2,32,96], index: 2, kind: input, shape index: {}]   ;;  %s2819_s3 = inlined_call_operand.vmem [shape: f32[2,1,96], index: 3, kind: input, shape index: {}]   ;;  %s2820_s4 = inlined_call_operand.vmem [shape: f32[2,32,32], index: 4, kind: input, shape index: {}]   ;;  %s2821_s5 = inlined_call_operand.hbm [shape: f32[2,1,32], index: 5, kind: input, shape index: {}]   ;;  %s2822_s6 = inlined_call_operand.hbm [shape: f32[2,1,32], index: 6, kind: input, shape index: {}]   ;;  %s2823_s7 = inlined_call_operand.hbm [shape: f32[2,1,32], index: 7, kind: input, shape index: {}]   ;;  %s2824_s8 = inlined_call_operand.vmem [shape: f32[2,32,64], index: 8, kind: input, shape index: {}]   ;;  %s2825_s9 = inlined_call_operand.vmem [shape: f32[2,1,64], index: 9, kind: input, shape index: {}]   ;;  %s2826_s10 = inlined_call_operand.vmem [shape: f32[2,64,32], index: 10, kind: input, shape index: {}]   ;;  %s2827_s11 = inlined_call_operand.vmem [shape: f32[2,1,32], index: 11, kind: input, shape index: {}]   ;;  %s2828_s12 = inlined_call_operand.vmem [shape: f32[2,1,32], index: 12, kind: input, shape index: {}]   ;;  %s2829_s13 = inlined_call_operand.hbm [shape: f32[2,1,32], index: 13, kind: input, shape index: {}]   ;;  %s2830_s14 = inlined_call_operand.vmem [shape: f32[32,32], index: 14, kind: input, shape index: {}]   ;;  %s2831_s15 = inlined_call_operand.vmem [shape: f32[1,32], index: 15, kind: input, shape index: {}]   ;;  %s2832_s16 = inlined_call_operand.vmem [shape: f32[32,3], index: 16, kind: input, shape index: {}]   ;;  %s2833_s17 = inlined_call_operand.vmem [shape: f32[1,3], index: 17, kind: input, shape index: {}]   ;;  %s2834_s18 = inlined_call_operand.vmem [shape: s32[2,1], index: 18, kind: input, shape index: {}]   ;;  %s2835_s19 = inlined_call_operand.hbm [shape: f32[1,1], index: 19, kind: output, shape index: {0}]   ;;  %s2836_s20 = inlined_call_operand.hbm [shape: f32[2,3], index: 20, kind: output, shape index: {1}]  }
   0x1   :  { %2841 = sst [smem:[#allocation24_spill]] %s2816_s0 }
   0x2   :  { %2842 = sst [smem:[#allocation25_spill]] %s2817_s1 }
   0x3   :  { %2843 = sst [smem:[#allocation26_spill]] %s2818_s2 }
   0x4   :  { %2844 = sst [smem:[#allocation27_spill]] %s2819_s3 }
   0x5   :  { %2845 = sst [smem:[#allocation28_spill]] %s2820_s4 }
   0x6   :  { %2846 = sst [smem:[#allocation29_spill]] %s2821_s5 }
   0x7   :  { %2847 = sst [smem:[#allocation30_spill]] %s2823_s7 }
   0x8   :  { %2848 = sst [smem:[#allocation31_spill]] %s2831_s15 }
   0x9   :  { %2849 = sst [smem:[#allocation32_spill]] %s2832_s16 }
   0xa   :  { %2850 = sst [smem:[#allocation33_spill]] %s2833_s17 }
   0xb   :  { %2851 = sst [smem:[#allocation34_spill]] %s2834_s18 }
   0xc   :  { %2852 = sst [smem:[#allocation35_spill]] %s2835_s19 }
   0xd   :  { %2853 = sst [smem:[#allocation36_spill]] %s2836_s20 }
   0xe   :  { %26 = vsyncpa [#allocation5], 0 }
   0xf   :  { %27 = vsyncpa [#allocation8], 0 }
  0x10   :  { %29 = vsyncpa [#allocation8 + $0x1], 0 }
  0x11   :  { %30 = vsyncpa [#allocation11], 0 }
  0x12   :  { %32 = vsyncpa [#allocation11 + $0x1], 0 }
  0x13   :  { %33 = vsyncpa [#allocation6], 0 }
  0x14   :  { %34 = vsyncpa [#allocation15], 0  ;;  %s2412_s1 = smov 0   ;;  %s2414_s22 = smov 0  }
  0x15   :  { %s2416_s23 = smov 0   ;;  %s2418_s24 = smov 0  }
  0x16 LB: > { %2854 = sst [smem:[#allocation21_spill]] %s2285_s23  ;;  %s2433_s2 = sadd.s32 1, %s2289_s24   ;;  %s2289_s24 = sphi %s2418_s24, %s2878_s24   ;;  %s2285_s23 = sphi %s2416_s23, %s2880_s23   ;;  %s2281_s22 = sphi %s2414_s22, %s2882_s22   ;;  %s2277_s1 = sphi %s2412_s1, %s2881_s1  }
  0x17   : > { %2855 = sst [smem:[#allocation22_spill]] %s2433_s2  ;;  %s167_s25 = sadd.s32 1, %s2285_s23 }
  0x18   : > { %s164_s3 = ssub.s32 %s2289_s24, %s2433_s2  ;;  %p174_p0 = scmp.ne.s32.totalorder %s2285_s23, %s2281_s22 }
  0x19   : > { %p165_p1 = scmp.eq.s32.totalorder %s164_s3, 0  ;;  %p175_p2 = scmp.eq.s32.totalorder %s2289_s24, 0 }
  0x1a   : > { %p1929_p3 = scmp.lt.s32.totalorder %s2289_s24, 2  ;;  %s2447_s28 = sand.u32 1, %s2285_s23  }
  0x1b   : > { %s2443_s26 = scalar_select %p165_p1, %s2285_s23, %s167_s25  }
  0x1c   : > { %p176_p4 = por %p175_p2, %p174_p0  ;;  %s2857_s5 = sld [smem:[#allocation29_spill]] }
  0x1d   : > { %2856 = sst [smem:[#allocation23_spill]] %s2443_s26  ;;  %s616_s21 = scalar_lea.vmem [#allocation7], %s2447_s28 }
  0x1e   : > { %s623_s2 = sshll.u32 %s616_s21, 4  ;;  %p2454_p5 = pnand %p1929_p3, %p176_p4  ;;  %s624_s2 = int_to_ptr.vmem [resolvable:$true] %s623_s2 }
  0x1f   : > { %s2859_s7 = sld [smem:[#allocation30_spill]]  ;;  %s2860_s4 = sand.u32 1, %s2289_s24  }
  0x20   : > { %s2466_s29 = scalar_lea.sflag [#allocation8], %s2860_s4  ;;  %p2037_p7 = pneg %p2454_p5 }
  0x22   : > { %s619_s30 = scalar_lea.hbm %s2857_s5, %s2289_s24  ;;  %s2040_s25 = scalar_lea.hbm %s2857_s5, 2 }
  0x23   : > { %s621_s0 = sshll.u32 %s619_s30, 4  ;;  %s622_s0 = int_to_ptr.hbm [resolvable:$true] %s621_s0 }
  0x24   : > { %s2033_s30 = sshra.s32 %s622_s0, 4  ;;  %s2034_s30 = int_to_ptr.hbm [resolvable:$true] %s2033_s30 }
  0x25   : > { %s653_s27 = scalar_lea.hbm %s2859_s7, %s2289_s24  ;;  %s2035_s21 = scalar_lea.hbm %s2034_s30, 1 }
  0x26   : > { %s2462_s23 = sshll.u32 %s653_s27, 4  ;;  %p2036_p6 = scmp.ne.s32.totalorder %s2034_s30, %s2035_s21  ;;  %s656_s23 = int_to_ptr.hbm [resolvable:$true] %s2462_s23 }
  0x27   : > { %p2041_p10 = scmp.lt.s32.totalorder %s2034_s30, %s2857_s5  ;;  %p2042_p11 = scmp.lt.s32.totalorder %s2040_s25, %s2035_s21 }
  0x28   : > { %p2038_p8 = pnand %p2037_p7, %p2036_p6 }
  0x29   : > { %p2043_p12 = por %p2042_p11, %p2041_p10 }
  0x2a   : > { %p2039_p9 = pneg %p2038_p8 }
  0x2c   : > { %p2044_p13 = pnand %p2043_p12, %p2039_p9 }
  0x2e   : > { %2047 = shalt.err (!%p2044_p13)
}
  0x2f   : > { %1918 = dma.hbm_to_vmem [thread:$0]  (!%p2454_p5), %s622_s0, 16, %s624_s2, %s2466_s29  }
  0x30   : > { %s650_s4 = scalar_lea.vmem [#allocation10], %s2447_s28  ;;  %s2861_s26 = sand.u32 1, %s2289_s24  }
  0x31   : > { %s657_s20 = sshll.u32 %s650_s4, 4  ;;  %s2486_s18 = scalar_lea.sflag [#allocation11], %s2861_s26  ;;  %s658_s20 = int_to_ptr.vmem [resolvable:$true] %s657_s20 }
  0x32   : > { %s2063_s19 = sshra.s32 %s656_s23, 4  ;;  %s2070_s27 = scalar_lea.hbm %s2859_s7, 2  ;;  %s2064_s19 = int_to_ptr.hbm [resolvable:$true] %s2063_s19 }
  0x33   : > { %s2065_s30 = scalar_lea.hbm %s2064_s19, 1  ;;  %p2071_p3 = scmp.lt.s32.totalorder %s2064_s19, %s2859_s7 }
  0x34   : > { %p2066_p0 = scmp.ne.s32.totalorder %s2064_s19, %s2065_s30  ;;  %p2072_p4 = scmp.lt.s32.totalorder %s2070_s27, %s2065_s30 }
  0x36   : > { %p2068_p1 = pnand %p2066_p0, %p2037_p7  ;;  %p2073_p6 = por %p2072_p4, %p2071_p3 }
  0x38   : > { %p2069_p2 = pneg %p2068_p1 }
  0x3a   : > { %p2074_p8 = pnand %p2073_p6, %p2069_p2 }
  0x3c   : > { %2077 = shalt.err (!%p2074_p8)
}
  0x3d   : > { %1924 = dma.hbm_to_vmem [thread:$0]  (!%p2454_p5), %s656_s23, 16, %s658_s20, %s2486_s18  }
  0x3e   : > { %s2501_s4 = sadd.s32 4294967295, %s2289_s24   ;;  %p180_p9 = scmp.ne.s32.totalorder %s2281_s22, %s2277_s1 }
  0x3f   : > { %p181_p10 = scmp.eq.s32.totalorder %s2501_s4, 0  ;;  %p1839_p11 = scmp.ge.s32.totalorder %s2289_s24, 1 }
  0x40   : > { %p546_p12 = scmp.lt.s32.totalorder %s2289_s24, 3  ;;  %p1840_p0 = scmp.ne.s32.totalorder %s2501_s4, 0 }
  0x41   : > { %p2510_p13 = por %p181_p10, %p180_p9  ;;  %s2864_s30 = sld [smem:[#allocation24_spill]] }
  0x42   : > { %p2515_p1 = pnand %p1839_p11, %p546_p12  ;;  %s2291_s1 = smov [#allocation4]  }
  0x43   : > { %s559_s25 = sshll.u32 %s2291_s1, 4  ;;  %s636_s0 = scalar_lea.hbm %s2822_s6, %s2289_s24  ;;  %s560_s25 = int_to_ptr.vmem [resolvable:$true] %s559_s25 }
  0x44   : > { %p1911_p2 = pneg %p2515_p1  ;;  %s638_s5 = sshll.u32 %s636_s0, 4  ;;  %s639_s5 = int_to_ptr.hbm [resolvable:$true] %s638_s5 }
  0x45   : > { %s2292_s7 = smov 128   ;;  %s2293_s17 = smov 8  }
  0x46   : > { %p1912_p3 = pnand %p1911_p2, %p181_p10  ;;  %s633_s20 = scalar_lea.vmem [#allocation9], %s2447_s28 }
  0x47   : > { %s557_s21 = sshll.u32 %s2864_s30, 4  ;;  %s640_s19 = sshll.u32 %s633_s20, 4  ;;  %s558_s21 = int_to_ptr.hbm [resolvable:$true] %s557_s21  ;;  %s641_s19 = int_to_ptr.vmem [resolvable:$true] %s640_s19 }
  0x48   : > { %1914 = dma.hbm_to_vmem [thread:$0]  (!%p1912_p3), %s558_s21, 256, %s560_s25, [#allocation5], %s2292_s7, %s2292_s7, %s2293_s17  }
  0x49   : > { %s2123_s30 = sshra.s32 %s639_s5, 4  ;;  %s2130_s27 = scalar_lea.hbm %s2822_s6, 2  ;;  %s2124_s30 = int_to_ptr.hbm [resolvable:$true] %s2123_s30 }
  0x4a   : > { %s2125_s15 = scalar_lea.hbm %s2124_s30, 1  ;;  %p2131_p9 = scmp.lt.s32.totalorder %s2124_s30, %s2822_s6 }
  0x4b   : > { %p2126_p4 = scmp.ne.s32.totalorder %s2124_s30, %s2125_s15  ;;  %p2132_p11 = scmp.lt.s32.totalorder %s2130_s27, %s2125_s15 }
  0x4d   : > { %p2128_p6 = pnand %p2126_p4, %p2037_p7  ;;  %p2133_p12 = por %p2132_p11, %p2131_p9 }
  0x4f   : > { %p2129_p8 = pneg %p2128_p6 }
  0x51   : > { %p2134_p2 = pnand %p2133_p12, %p2129_p8 }
  0x53   : > { %2137 = shalt.err (!%p2134_p2)
}
  0x54   : > { %1921 = dma.hbm_to_vmem [thread:$0]  (!%p2454_p5), %s639_s5, 16, %s641_s19, %s2466_s29  }
  0x55   : > { %s704_s16 = scalar_lea.hbm %s2829_s13, %s2289_s24  ;;  %s701_s21 = scalar_lea.vmem [#allocation12], %s2447_s28 }
  0x56   : > { %s708_s25 = sshll.u32 %s701_s21, 4  ;;  %s706_s20 = sshll.u32 %s704_s16, 4  ;;  %s709_s25 = int_to_ptr.vmem [resolvable:$true] %s708_s25  ;;  %s707_s20 = int_to_ptr.hbm [resolvable:$true] %s706_s20 }
  0x57   : > { %s2153_s15 = sshra.s32 %s707_s20, 4  ;;  %s2160_s5 = scalar_lea.hbm %s2829_s13, 2  ;;  %s2154_s15 = int_to_ptr.hbm [resolvable:$true] %s2153_s15 }
  0x58   : > { %s2155_s30 = scalar_lea.hbm %s2154_s15, 1  ;;  %p2161_p8 = scmp.lt.s32.totalorder %s2154_s15, %s2829_s13 }
  0x59   : > { %p2156_p3 = scmp.ne.s32.totalorder %s2154_s15, %s2155_s30  ;;  %p2162_p9 = scmp.lt.s32.totalorder %s2160_s5, %s2155_s30 }
  0x5b   : > { %p2158_p4 = pnand %p2156_p3, %p2037_p7  ;;  %p2163_p11 = por %p2162_p9, %p2161_p8 }
  0x5d   : > { %p2159_p6 = pneg %p2158_p4 }
  0x5f   : > { %p2164_p12 = pnand %p2163_p11, %p2159_p6 }
  0x61   : > { %2167 = shalt.err (!%p2164_p12)
}
  0x62   : > { %1927 = dma.hbm_to_vmem [thread:$0]  (!%p2454_p5), %s707_s20, 16, %s709_s25, %s2486_s18  }
  0x63   : > { %717 = sbr.rel (%p2515_p1) target bundleno = 3109 (0xc25), region = 96 }
  0x68   : > { %2256 = dma.done.wait (%p181_p10), [#allocation5], 256  }
  0x69   : > { %2258 = vsyncadd (%p181_p10), [#allocation5], 4294967040  ;;  %s724_s24 = sand.u32 1, %s2501_s4   ;;  %s2568_s28 = sand.u32 1, %s2281_s22  }
  0x6a   : > { %s725_s2 = scalar_lea.sflag [#allocation8], %s724_s24 }
  0x6b   : > { %2260 = dma.done.wait (%p2510_p13), %s725_s2, 32  }
  0x6c   : > { %2262 = vsyncadd (%p2510_p13), %s725_s2, 4294967264  ;;  %s743_s23 = scalar_lea.sflag [#allocation11], %s724_s24 }
  0x6d   : > { %2264 = dma.done.wait (%p2510_p13), %s743_s23, 32  }
  0x6e   : > { %2266 = vsyncadd (%p2510_p13), %s743_s23, 4294967264  ;;  %p850_p5 = scmp.lt.s32.totalorder %s2501_s4, 1  ;;  %s2865_s25 = sld [smem:[#allocation27_spill]] }
  0x6f   : > { %s2866_s30 = sld [smem:[#allocation26_spill]] }
  0x70   : > { %s2583_s7 = scalar_select %p850_p5, %s2501_s4, 1 }
  0x71   : > { %s2867_s29 = sld [smem:[#allocation28_spill]] }
  0x72   : > { %s1883_s17 = sshll.u32 %s2583_s7, 5  ;;  %s870_s3 = scalar_lea.vmem %s2825_s9, %s2583_s7 }
  0x73   : > { %s2601_s23 = scalar_lea.vmem %s2824_s8, %s1883_s17  ;;  %s1886_s16 = sshll.u32 %s2583_s7, 6 }
  0x74   : > { %s857_s20 = scalar_lea.vmem %s2865_s25, %s2583_s7  ;;  %s878_s15 = scalar_lea.vmem %s2827_s11, %s2583_s7 }
  0x75   : > { %s854_s1 = scalar_lea.vmem %s2866_s30, %s1883_s17  ;;  %s2615_s27 = scalar_lea.vmem %s2826_s10, %s1886_s16 }
  0x76   : > { %s881_s24 = scalar_lea.vmem %s2828_s12, %s2583_s7  ;;  %885 = sbr.rel (%p1840_p0) target bundleno = 126 (0x7e), region = 120 }
  0x77   : > { %s2596_s19 = scalar_lea.vmem %s2867_s29, %s1883_s17  ;;  %s754_s17 = scalar_lea.vmem [#allocation12], %s2568_s28 }
  0x7b   : > { %v886_v0 = vld [vmem:[#allocation4] sm:$0xff]  ;;  %vm888_vm0 = vcmask 261120   ;;  %v887_v1 = vld [vmem:[#allocation4 + $0x8] sm:$0xff] }
  0x7c   : > { %889 = vst.msk [vmem:[#allocation2] sm:$0xff] %vm888_vm0, %v886_v0 }
  0x7d   : > { %890 = vst.msk [vmem:[#allocation2 + $0x8] sm:$0xff] %vm888_vm0, %v887_v1 }
  0x7e PF: > { %v906_v2 = vld [vmem:[%s854_s1 + $0x18] sm:$0xff]  ;;  %v905_v3 = vld [vmem:[%s854_s1 + $0x10] sm:$0xff]  ;;  %v904_v4 = vld [vmem:[%s854_s1 + $0x8] sm:$0xff]  ;;  %vm911_vm1 = vcmask 261120   ;;  %s2294_s18 = smov 64   ;;  %s2295_s0 = smov 96  }
  0x7f   : > { %930 = vmatpush.msra.mxu0 %v906_v2  ;;  %v903_v5 = vld [vmem:[%s854_s1] sm:$0xff]  ;;  %s2296_s1 = smov 80   ;;  %s2297_s2 = smov 112   ;;  %vm946_vm2 = vcmask 130048   ;;  %v2298_v18 = vmov -10000.0   ;;  %vm1000_vm4 = vcmask 64512  }
  0x80   : > { %v1983_v7 = vld [vmem:[%s857_s20] ss:$0 sm:$0xff]  ;;  %s2868_s21 = sld [smem:[#allocation25_spill]]  ;;  %s2299_s25 = smov 48   ;;  %vm1215_vm6 = vcmask 261248   ;;  %vm1389_vm14 = vcmask 523264  }
  0x81   : > { %931 = vmatpush.msra.mxu0 %v905_v3  ;;  %s2300_s26 = smov 16   ;;  %s2869_s30 = scalar_lea.vmem [#allocation7], %s2568_s28 }
  0x82   : > { %p1873_p7 = scmp.ne.s32.totalorder %s2501_s4, 1 }
  0x83   : > { %932 = vmatpush.msra.mxu0 %v904_v4  ;;  %v2624_v6 = vld [vmem:[#allocation2] sm:$0xff]  ;;  %s2874_s7 = sld [smem:[#allocation33_spill]] (!%p1873_p7) }
  0x84   : > { %v2640_v14 = vld [vmem:[#allocation2 + $0x8] sm:$0xff] }
  0x85   : > { %933 = vmatpush.msra.mxu0 %v903_v5 }
  0x86   : > { %1853 = vmatmul.msk.f32.vlgmr.msra.gmra.mxu0 %vm911_vm1, %v2624_v6  ;;  %v1888_v15 = vld [vmem:[%s2868_s21] sm:$0xf]  }
  0x87   : > { %v1889_v16 = vunpack.c.0.s8 %v1888_v15  ;;  %v1890_v42 = vunpack.c.1.s8 %v1888_v15 }
  0x89   : > { %v897_v17 = vcvt.s32.f32 %v1889_v16  ;;  %v898_v43 = vcvt.s32.f32 %v1890_v42 }
  0x8b   : > { %vm899_vm3 = vcmp.gt.f32.partialorder %v897_v17, 0.0  ;;  %vm900_vm5 = vcmp.gt.f32.partialorder %v898_v43, 0.0 }
  0x8c   : > { %v901_v19 = vsel %vm899_vm3, 0.0, %v2298_v18  ;;  %v902_v44 = vsel %vm900_vm5, 0.0, %v2298_v18 }
  0x8e   : > { %1854 = vmatmul.msk.f32.gmra.mxu0 %vm911_vm1, %v2640_v14 }
 0x103   : > { %v935_v8 = vpop.f32.mrf.mxu0 }
 0x104   : > { %v2628_v9 = vadd.f32 %v1983_v7, %v935_v8 }
 0x106   : > { %1023 = vrot.lane.b32.xlu2 %v2628_v9, %s2294_s18  ;;  %944 = vrot.lane.b32.xlu0 %v2628_v9, %s2295_s0  ;;  %v941_v10 = vmul.f32 0.25, %v2628_v9 }
 0x10b   : > { %v938_v23 = vpop.f32.mrf.mxu0 }
 0x10c   : > { %v2648_v24 = vadd.f32 %v1983_v7, %v938_v23 }
 0x10e   : > { %1079 = vrot.lane.b32.xlu2 %v2628_v9, %s2296_s1  ;;  %v942_v28 = vmul.f32 0.25, %v2648_v24 }
 0x116   : > { %1077 = vrot.lane.b32.xlu2 %v941_v10, %s2297_s2 }
 0x11e   : > { %1107 = vrot.lane.b32.xlu2 %v2648_v24, %s2296_s1 }
 0x126   : > { %1105 = vrot.lane.b32.xlu2 %v942_v28, %s2297_s2 }
 0x160   : > { %v1024_v11 = vpop.permute.xlu2 %1023 }
 0x168   : > { %v1080_v13 = vpop.permute.xlu2 %1079 }
 0x170   : > { %v1078_v34 = vpop.permute.xlu2 %1077 }
 0x178   : > { %v945_v12 = vpop.permute.xlu0 %944  ;;  %v1108_v36 = vpop.permute.xlu2 %1107 }
 0x179   : > { %1855 = vmatpush.xpose.msk.msra.mxu1 %vm946_vm2, %v945_v12 }
 0x17c   : > { %1856 = vmatmul.msk.f32.vlgmr.msra.gmra.mxu1 %vm946_vm2, %v941_v10 }
 0x17d   : > { %1044 = vmatpush.msrb.mxu1 %v1024_v11 }
 0x17f   : > { %1861 = vmatpush.xpose.msk.msra.mxu1 %vm946_vm2, %v1080_v13 }
 0x180   : > { %v1106_v37 = vpop.permute.xlu2 %1105 }
 0x1f9   : > { %v969_v20 = vpop.f32.mrf.mxu1 }
 0x1fa   : > { %v970_v21 = vadd.f32 %v969_v20, %v901_v19  ;;  %v1222_v20 = vld [vmem:[%s2596_s19 + $0x10] sm:$0xff] }
 0x1fc   : > { %v1001_v22 = vsel %vm1000_vm4, %v970_v21, -inf }
 0x1fd   : > { %1002 = vmax.xlane.f32.xlu0 %v1001_v22  ;;  %v1220_v22 = vld [vmem:[%s2596_s19] sm:$0xff] }
 0x270   : > { %v1003_v25 = vpop.xlane.xlu0 %1002 }
 0x271   : > { %v1007_v26 = vsub.f32 %v970_v21, %v1003_v25  ;;  %v1221_v21 = vld [vmem:[%s2596_s19 + $0x8] sm:$0xff] }
 0x273   : > { %v1009_v27 = vmul.f32 1.442695, %v1007_v26 }
 0x275   : > { %1991 = vpow2.f32 %v1009_v27  ;;  %v1984_v27 = vld [vmem:[%s2869_s30] ss:$0 sm:$0xff] }
 0x27b   : > { %v1992_v29 = vpop.eup %1991 }
 0x27c   : > { %v1013_v30 = vsel %vm1000_vm4, %v1992_v29, 0.0 }
 0x27d   : > { %1014 = vadd.xlane.f32.xlu1 %v1013_v30 }
 0x296   : > { %973 = vrot.lane.b32.xlu1 %v2648_v24, %s2295_s0  ;;  %s2875_s0 = sld [smem:[#allocation34_spill]] (!%p1873_p7) }
 0x2f0   : > { %v1015_v31 = vpop.xlane.xlu1 %1014 }
 0x2f1   : > { %1993 = vrcp.f32 %v1015_v31 }
 0x2f7   : > { %v1994_v32 = vpop.eup %1993 }
 0x2f8   : > { %v1021_v33 = vmul.f32 %v1994_v32, %v1992_v29 }
 0x2fa   : > { %1859 = vmatmul.msk.f32.vlgmr.msrb.gmra.mxu1 %vm1000_vm4, %v1021_v33 }
 0x302   : > { %1862 = vmatmul.msk.f32.vlgmr.msra.gmra.mxu1 %vm946_vm2, %v1078_v34 }
 0x308   : > { %v974_v35 = vpop.permute.xlu1 %973 }
 0x309   : > { %1857 = vmatpush.xpose.msk.msra.mxu2 %vm946_vm2, %v974_v35 }
 0x30c   : > { %1858 = vmatmul.msk.f32.vlgmr.msra.gmra.mxu2 %vm946_vm2, %v942_v28 }
 0x30d   : > { %1863 = vmatpush.xpose.msk.msrb.mxu2 %vm946_vm2, %v1108_v36  ;;  %v2301_v36 = vmov 32.0  }
 0x314   : > { %1864 = vmatmul.msk.f32.vlgmr.msrb.gmra.mxu2 %vm946_vm2, %v1106_v37 }
 0x377   : > { %v1046_v38 = vpop.f32.mrf.mxu1 }
 0x378   : > { %1075 = vst.msk [vmem:[#allocation3] sm:$0xff] %vm946_vm2, %v1046_v38 }
 0x37f   : > { %v1102_v39 = vpop.f32.mrf.mxu1 }
 0x380   : > { %v1103_v40 = vadd.f32 %v1102_v39, %v901_v19  ;;  %v1223_v19 = vld [vmem:[%s2596_s19 + $0x18] sm:$0xff]  ;;  %s2870_s19 = scalar_lea.vmem [#allocation9], %s2568_s28 }
 0x381   : > { %1246 = vmatpush.msra.mxu2 %v1223_v19 }
 0x382   : > { %v1133_v41 = vsel %vm1000_vm4, %v1103_v40, -inf }
 0x383   : > { %1134 = vmax.xlane.f32.xlu2 %v1133_v41  ;;  %1247 = vmatpush.msra.mxu2 %v1222_v20 }
 0x385   : > { %1248 = vmatpush.msra.mxu2 %v1221_v21  ;;  %v1384_v21 = vld [vmem:[%s2615_s27 + $0x38] sm:$0xff] }
 0x387   : > { %1249 = vmatpush.msra.mxu2 %v1220_v22  ;;  %v1383_v22 = vld [vmem:[%s2615_s27 + $0x30] sm:$0xff] }
 0x38f   : > { %v997_v45 = vpop.f32.mrf.mxu2 }
 0x390   : > { %v998_v46 = vadd.f32 %v997_v45, %v902_v44 }
 0x392   : > { %v1004_v47 = vsel %vm1000_vm4, %v998_v46, -inf }
 0x393   : > { %1005 = vmax.xlane.f32.xlu1 %v1004_v47 }
 0x397   : > { %v1130_v48 = vpop.f32.mrf.mxu2 }
 0x398   : > { %v1131_v49 = vadd.f32 %v1130_v48, %v902_v44 }
 0x39a   : > { %v1136_v50 = vsel %vm1000_vm4, %v1131_v49, -inf }
 0x39b   : > { %1137 = vmax.xlane.f32.xlu0 %v1136_v50 }
 0x3ac   : > { %1155 = vrot.lane.b32.xlu1 %v2628_v9, %s2299_s25 }
 0x3f6   : > { %v1135_v51 = vpop.xlane.xlu2 %1134 }
 0x3f7   : > { %v1139_v54 = vsub.f32 %v1103_v40, %v1135_v51  ;;  %v1325_v51 = vld [vmem:[%s2601_s23 + $0x18] sm:$0xff] }
 0x3f8   : > { %1348 = vmatpush.msrb.mxu0 %v1325_v51  ;;  %v1988_v51 = vld [vmem:[%s878_s15] ss:$0 sm:$0xff]  ;;  %s2873_s15 = sld [smem:[#allocation31_spill]] (!%p1873_p7) }
 0x3f9   : > { %v1141_v56 = vmul.f32 1.442695, %v1139_v54  ;;  %v1322_v54 = vld [vmem:[%s2601_s23] sm:$0xff] }
 0x406   : > { %v1006_v52 = vpop.xlane.xlu1 %1005 }
 0x407   : > { %v1008_v53 = vsub.f32 %v998_v46, %v1006_v52  ;;  %v1324_v52 = vld [vmem:[%s2601_s23 + $0x10] sm:$0xff] }
 0x408   : > { %1349 = vmatpush.msrb.mxu0 %v1324_v52 }
 0x409   : > { %v1011_v55 = vmul.f32 1.442695, %v1008_v53  ;;  %v1323_v53 = vld [vmem:[%s2601_s23 + $0x8] sm:$0xff]  ;;  %s2871_s23 = scalar_lea.vmem [#allocation10], %s2568_s28 }
 0x40a   : > { %1350 = vmatpush.msrb.mxu0 %v1323_v53 }
 0x40b   : > { %1995 = vpow2.f32 %v1011_v55 }
 0x40c   : > { %1997 = vpow2.f32 %v1141_v56  ;;  %1351 = vmatpush.msrb.mxu0 %v1322_v54 }
 0x40e   : > { %v1138_v57 = vpop.xlane.xlu0 %1137 }
 0x40f   : > { %v1140_v58 = vsub.f32 %v1131_v49, %v1138_v57 }
 0x411   : > { %v1996_v59 = vpop.eup %1995  ;;  %v1143_v60 = vmul.f32 1.442695, %v1140_v58 }
 0x412   : > { %v1016_v61 = vsel %vm1000_vm4, %v1996_v59, 0.0  ;;  %v1998_v62 = vpop.eup %1997 }
 0x413   : > { %1999 = vpow2.f32 %v1143_v60  ;;  %1017 = vadd.xlane.f32.xlu0 %v1016_v61  ;;  %v1145_v1 = vsel %vm1000_vm4, %v1998_v62, 0.0 }
 0x419   : > { %v2000_v63 = vpop.eup %1999 }
 0x41a   : > { %v1148_v0 = vsel %vm1000_vm4, %v2000_v63, 0.0 }
 0x41b   : > { %1149 = vadd.xlane.f32.xlu2 %v1148_v0  ;;  %1146 = vadd.xlane.f32.xlu0 %v1145_v1 }
 0x41e   : > { %v1156_v12 = vpop.permute.xlu1 %1155 }
 0x42f   : > { %1049 = vrot.lane.b32.xlu0 %v2648_v24, %s2294_s18 }
 0x433   : > { %1181 = vrot.lane.b32.xlu2 %v2648_v24, %s2299_s25  ;;  %s2872_s25 = sld [smem:[#allocation32_spill]] (!%p1873_p7) }
 0x486   : > { %v1018_v3 = vpop.xlane.xlu0 %1017 }
 0x48e   : > { %v1150_v2 = vpop.xlane.xlu2 %1149  ;;  %v1147_v8 = vpop.xlane.xlu0 %1146 }
 0x48f   : > { %2001 = vrcp.f32 %v1150_v2 }
 0x490   : > { %2003 = vrcp.f32 %v1018_v3 }
 0x491   : > { %2005 = vrcp.f32 %v1147_v8 }
 0x492   : > { %2007 = vrcp.f32 %v2301_v36 }
 0x495   : > { %v2002_v4 = vpop.eup %2001 }
 0x496   : > { %v1154_v5 = vmul.f32 %v2002_v4, %v2000_v63  ;;  %v1182_v7 = vpop.permute.xlu2 %1181  ;;  %v2004_v9 = vpop.eup %2003 }
 0x497   : > { %1202 = vmatpush.msrb.mxu1 %v1182_v7  ;;  %v1022_v11 = vmul.f32 %v2004_v9, %v1996_v59  ;;  %v2006_v13 = vpop.eup %2005 }
 0x498   : > { %1866 = vmatmul.msk.f32.vlgmr.msrb.gmra.mxu1 %vm1000_vm4, %v1154_v5  ;;  %v1153_v15 = vmul.f32 %v2006_v13, %v1998_v62  ;;  %v2008_v37 = vpop.eup %2007  ;;  %v1985_v5 = vld [vmem:[%s2870_s19] ss:$0 sm:$0xff] }
 0x499   : > { %v1268_v38 = vmul.f32 32.0, %v2008_v37  ;;  %vm1272_vm7 = vweird.f32 %v2008_v37 }
 0x49b   : > { %v1269_v39 = vsub.f32 1.0, %v1268_v38 }
 0x49d   : > { %v1270_v40 = vmul.f32 %v2008_v37, %v1269_v39 }
 0x49f   : > { %v1271_v41 = vadd.f32 %v2008_v37, %v1270_v40 }
 0x4a1   : > { %v1050_v10 = vpop.permute.xlu0 %1049 }
 0x4a2   : > { %1070 = vmatpush.msra.mxu3 %v1050_v10  ;;  %v1986_v10 = vld [vmem:[%s2871_s23] ss:$0 sm:$0xff] }
 0x4a3   : > { %1860 = vmatmul.msk.f32.vlgmr.msra.gmra.mxu3 %vm1000_vm4, %v1022_v11 }
 0x4a4   : > { %1176 = vmatpush.msrb.mxu3 %v1156_v12 }
 0x4a6   : > { %1404 = vmatpush.msra.mxu3 %v1384_v21 }
 0x4a8   : > { %1405 = vmatpush.msra.mxu3 %v1383_v22  ;;  %v1989_v22 = vld [vmem:[%s881_s24] ss:$0 sm:$0xff] }
 0x4ab   : > { %1865 = vmatmul.msk.f32.vlgmr.msrb.gmra.mxu3 %vm1000_vm4, %v1153_v15 }
 0x515   : > { %v1204_v16 = vpop.f32.mrf.mxu1 }
 0x516   : > { %1211 = vrot.lane.b32.xlu1 %v1204_v16, %s2300_s26 }
 0x526   : > { %v1072_v17 = vpop.f32.mrf.mxu3 }
 0x527   : > { %1076 = vst.msk [vmem:[#allocation3 + $0x8] sm:$0xff] %vm946_vm2, %v1072_v17 }
 0x52e   : > { %v1178_v18 = vpop.f32.mrf.mxu3 }
 0x52f   : > { %1209 = vrot.lane.b32.xlu0 %v1178_v18, %s2300_s26 }
 0x588   : > { %v1212_v23 = vpop.permute.xlu1 %1211 }
 0x589   : > { %1217 = vst.msk [vmem:[#allocation3 + $0x8] sm:$0xff] %vm1215_vm6, %v1212_v23  ;;  %v1382_v23 = vld [vmem:[%s2615_s27 + $0x28] sm:$0xff] }
 0x58a   : > { %1406 = vmatpush.msra.mxu3 %v1382_v23 }
 0x590   : > { %v1219_v26 = vld [vmem:[#allocation3 + $0x8] sm:$0xff] }
 0x5a1   : > { %v1210_v24 = vpop.permute.xlu0 %1209 }
 0x5a2   : > { %1216 = vst.msk [vmem:[#allocation3] sm:$0xff] %vm1215_vm6, %v1210_v24  ;;  %v1381_v24 = vld [vmem:[%s2615_s27 + $0x20] sm:$0xff] }
 0x5a3   : > { %1407 = vmatpush.msra.mxu3 %v1381_v24  ;;  %v1990_v24 = vld [vmem:[%s754_s17] ss:$0 sm:$0xff] }
 0x5a9   : > { %v1218_v25 = vld [vmem:[#allocation3] sm:$0xff] }
 0x5aa   : > { %1867 = vmatmul.msk.f32.vlgmr.msra.gmra.mxu2 %vm911_vm1, %v1218_v25  ;;  %v1380_v25 = vld [vmem:[%s2615_s27 + $0x18] sm:$0xff] }
 0x5ab   : > { %1408 = vmatpush.msra.mxu3 %v1380_v25 }
 0x5b2   : > { %1868 = vmatmul.msk.f32.gmra.mxu2 %vm911_vm1, %v1219_v26  ;;  %v1379_v26 = vld [vmem:[%s2615_s27 + $0x10] sm:$0xff] }
 0x5b3   : > { %1409 = vmatpush.msra.mxu3 %v1379_v26 }
 0x62d   : > { %v1251_v28 = vpop.f32.mrf.mxu2 }
 0x62e   : > { %v1252_v29 = vadd.f32 %v1984_v27, %v1251_v28  ;;  %v1377_v28 = vld [vmem:[%s2615_s27] sm:$0xff] }
 0x630   : > { %v1257_v30 = vadd.f32 %v1252_v29, %v2624_v6  ;;  %v2689_v6 = vsel %vm1272_vm7, %v2008_v37, %v1271_v41  ;;  %v1987_v29 = vld [vmem:[%s870_s3] ss:$0 sm:$0xff] }
 0x632   : > { %v1261_v31 = vsel %vm911_vm1, %v1257_v30, 0.0 }
 0x633   : > { %1262 = vadd.xlane.f32.xlu0 %v1261_v31 }
 0x635   : > { %v1254_v32 = vpop.f32.mrf.mxu2 }
 0x636   : > { %v1255_v33 = vadd.f32 %v1984_v27, %v1254_v32  ;;  %v1378_v27 = vld [vmem:[%s2615_s27 + $0x8] sm:$0xff] }
 0x637   : > { %1410 = vmatpush.msra.mxu3 %v1378_v27 }
 0x638   : > { %v1258_v34 = vadd.f32 %v1255_v33, %v2640_v14 }
 0x639   : > { %1411 = vmatpush.msra.mxu3 %v1377_v28 }
 0x63a   : > { %v1264_v35 = vsel %vm911_vm1, %v1258_v34, 0.0 }
 0x63b   : > { %1265 = vadd.xlane.f32.xlu1 %v1264_v35 }
 0x6a6   : > { %v1263_v42 = vpop.xlane.xlu0 %1262 }
 0x6a7   : > { %v1274_v43 = vmul.f32 %v2689_v6, %v1263_v42 }
 0x6a9   : > { %v1276_v14 = vsub.f32 %v1257_v30, %v1274_v43 }
 0x6ab   : > { %v1278_v44 = vmul.f32 %v1276_v14, %v1276_v14 }
 0x6ad   : > { %v1280_v45 = vsel %vm911_vm1, %v1278_v44, 0.0 }
 0x6ae   : > { %1281 = vadd.xlane.f32.xlu2 %v1280_v45  ;;  %v1266_v46 = vpop.xlane.xlu1 %1265 }
 0x6af   : > { %v1275_v47 = vmul.f32 %v2689_v6, %v1266_v46 }
 0x6b1   : > { %v1277_v48 = vsub.f32 %v1258_v34, %v1275_v47 }
 0x6b3   : > { %v1279_v49 = vmul.f32 %v1277_v48, %v1277_v48 }
 0x6b5   : > { %v1283_v50 = vsel %vm911_vm1, %v1279_v49, 0.0 }
 0x6b6   : > { %1284 = vadd.xlane.f32.xlu0 %v1283_v50 }
 0x721   : > { %v1282_v55 = vpop.xlane.xlu2 %1281 }
 0x722   : > { %v1286_v56 = vmul.f32 %v1282_v55, %v2689_v6 }
 0x724   : > { %v1288_v57 = vadd.f32 1e-06, %v1286_v56 }
 0x726   : > { %2009 = vrsqrt.f32 %v1288_v57  ;;  %vm1296_vm9 = vweird.f32 %v1288_v57 }
 0x729   : > { %v1285_v58 = vpop.xlane.xlu0 %1284 }
 0x72a   : > { %v1287_v59 = vmul.f32 %v1285_v58, %v2689_v6 }
 0x72c   : > { %v2010_v60 = vpop.eup %2009  ;;  %v1289_v61 = vadd.f32 1e-06, %v1287_v59 }
 0x72d   : > { %v1291_v62 = vmul.f32 %v2010_v60, %v1288_v57  ;;  %vm1297_vm8 = vweird.f32 %v2010_v60 }
 0x72e   : > { %2011 = vrsqrt.f32 %v1289_v61  ;;  %vm1298_vm10 = vmor %vm1296_vm9, %vm1297_vm8  ;;  %vm1306_vm12 = vweird.f32 %v1289_v61 }
 0x72f   : > { %v1292_v63 = vmul.f32 %v2010_v60, %v1291_v62 }
 0x731   : > { %v1293_v0 = vmul.f32 0.5, %v1292_v63 }
 0x733   : > { %v1294_v1 = vsub.f32 1.5, %v1293_v0 }
 0x734   : > { %v2012_v2 = vpop.eup %2011 }
 0x735   : > { %v1295_v3 = vmul.f32 %v2010_v60, %v1294_v1  ;;  %v1301_v4 = vmul.f32 %v2012_v2, %v1289_v61  ;;  %vm1307_vm11 = vweird.f32 %v2012_v2 }
 0x736   : > { %vm1308_vm13 = vmor %vm1306_vm12, %vm1307_vm11 }
 0x737   : > { %v1299_v7 = vsel %vm1298_vm10, %v2010_v60, %v1295_v3  ;;  %v1302_v8 = vmul.f32 %v2012_v2, %v1301_v4 }
 0x738   : > { %v1310_v9 = vmul.f32 %v1299_v7, %v1276_v14 }
 0x739   : > { %v1303_v11 = vmul.f32 0.5, %v1302_v8 }
 0x73a   : > { %v1315_v12 = vmul.f32 %v1985_v5, %v1310_v9 }
 0x73b   : > { %v1304_v13 = vsub.f32 1.5, %v1303_v11 }
 0x73c   : > { %v1320_v15 = vadd.f32 %v1986_v10, %v1315_v12 }
 0x73d   : > { %v1305_v16 = vmul.f32 %v2012_v2, %v1304_v13 }
 0x73e   : > { %1869 = vmatmul.msk.f32.vlgmr.msrb.gmra.mxu0 %vm911_vm1, %v1320_v15 }
 0x73f   : > { %v1309_v17 = vsel %vm1308_vm13, %v2012_v2, %v1305_v16 }
 0x740   : > { %v1311_v18 = vmul.f32 %v1309_v17, %v1277_v48 }
 0x742   : > { %v1316_v19 = vmul.f32 %v1985_v5, %v1311_v18 }
 0x744   : > { %v1321_v20 = vadd.f32 %v1986_v10, %v1316_v19 }
 0x746   : > { %1870 = vmatmul.msk.f32.gmra.mxu0 %vm911_vm1, %v1321_v20 }
 0x7bb   : > { %v1353_v30 = vpop.f32.mrf.mxu0 }
 0x7bc   : > { %v1354_v31 = vadd.f32 %v1987_v29, %v1353_v30 }
 0x7be   : > { %v1361_v32 = vmul.f32 0.044715, %v1354_v31  ;;  %v1359_v44 = vmul.f32 0.5, %v1354_v31 }
 0x7c0   : > { %v1363_v33 = vmul.f32 %v1361_v32, %v1354_v31 }
 0x7c2   : > { %v1365_v34 = vmul.f32 %v1363_v33, %v1354_v31 }
 0x7c3   : > { %v1356_v35 = vpop.f32.mrf.mxu0 }
 0x7c4   : > { %v1367_v36 = vadd.f32 %v1365_v34, %v1354_v31  ;;  %v1357_v37 = vadd.f32 %v1987_v29, %v1356_v35 }
 0x7c6   : > { %v1369_v38 = vmul.f32 0.7978846, %v1367_v36  ;;  %v1362_v39 = vmul.f32 0.044715, %v1357_v37  ;;  %v1360_v48 = vmul.f32 0.5, %v1357_v37 }
 0x7c8   : > { %2013 = vtanh.f32 %v1369_v38  ;;  %v1364_v40 = vmul.f32 %v1362_v39, %v1357_v37 }
 0x7ca   : > { %v1366_v41 = vmul.f32 %v1364_v40, %v1357_v37 }
 0x7cc   : > { %v1368_v42 = vadd.f32 %v1366_v41, %v1357_v37 }
 0x7ce   : > { %v2014_v43 = vpop.eup %2013  ;;  %v1370_v14 = vmul.f32 0.7978846, %v1368_v42 }
 0x7cf   : > { %v1373_v45 = vadd.f32 1.0, %v2014_v43 }
 0x7d0   : > { %2015 = vtanh.f32 %v1370_v14 }
 0x7d1   : > { %v1375_v46 = vmul.f32 %v1373_v45, %v1359_v44 }
 0x7d3   : > { %1871 = vmatmul.msk.f32.vlgmr.msra.gmra.mxu3 %vm1389_vm14, %v1375_v46 }
 0x7d6   : > { %v2016_v47 = vpop.eup %2015 }
 0x7d7   : > { %v1374_v49 = vadd.f32 1.0, %v2016_v47 }
 0x7d9   : > { %v1376_v50 = vmul.f32 %v1374_v49, %v1360_v48 }
 0x7db   : > { %1872 = vmatmul.msk.f32.gmra.mxu3 %vm1389_vm14, %v1376_v50 }
 0x856   : > { %v1413_v52 = vpop.f32.mrf.mxu3 }
 0x857   : > { %v1414_v53 = vadd.f32 %v1988_v51, %v1413_v52 }
 0x859   : > { %v1419_v54 = vadd.f32 %v1414_v53, %v1320_v15 }
 0x85b   : > { %v1423_v55 = vsel %vm911_vm1, %v1419_v54, 0.0 }
 0x85c   : > { %1424 = vadd.xlane.f32.xlu1 %v1423_v55 }
 0x85e   : > { %v1416_v56 = vpop.f32.mrf.mxu3 }
 0x85f   : > { %v1417_v57 = vadd.f32 %v1988_v51, %v1416_v56 }
 0x861   : > { %v1420_v58 = vadd.f32 %v1417_v57, %v1321_v20 }
 0x863   : > { %v1426_v59 = vsel %vm911_vm1, %v1420_v58, 0.0 }
 0x864   : > { %1427 = vadd.xlane.f32.xlu0 %v1426_v59 }
 0x8cf   : > { %v1425_v60 = vpop.xlane.xlu1 %1424 }
 0x8d0   : > { %v1429_v61 = vmul.f32 %v1425_v60, %v2689_v6 }
 0x8d2   : > { %v1431_v62 = vsub.f32 %v1419_v54, %v1429_v61 }
 0x8d4   : > { %v1433_v63 = vmul.f32 %v1431_v62, %v1431_v62 }
 0x8d6   : > { %v1435_v0 = vsel %vm911_vm1, %v1433_v63, 0.0 }
 0x8d7   : > { %v1428_v1 = vpop.xlane.xlu0 %1427  ;;  %1436 = vadd.xlane.f32.xlu2 %v1435_v0 }
 0x8d8   : > { %v1430_v2 = vmul.f32 %v1428_v1, %v2689_v6 }
 0x8da   : > { %v1432_v3 = vsub.f32 %v1420_v58, %v1430_v2 }
 0x8dc   : > { %v1434_v4 = vmul.f32 %v1432_v3, %v1432_v3 }
 0x8de   : > { %v1438_v5 = vsel %vm911_vm1, %v1434_v4, 0.0 }
 0x8df   : > { %1439 = vadd.xlane.f32.xlu1 %v1438_v5 }
 0x94a   : > { %v1437_v7 = vpop.xlane.xlu2 %1436 }
 0x94b   : > { %v1441_v8 = vmul.f32 %v1437_v7, %v2689_v6 }
 0x94d   : > { %v1443_v9 = vadd.f32 1e-06, %v1441_v8 }
 0x94f   : > { %2017 = vrsqrt.f32 %v1443_v9  ;;  %vm1451_vm0 = vweird.f32 %v1443_v9 }
 0x952   : > { %v1440_v10 = vpop.xlane.xlu1 %1439 }
 0x953   : > { %v1442_v11 = vmul.f32 %v1440_v10, %v2689_v6 }
 0x955   : > { %v2018_v12 = vpop.eup %2017  ;;  %v1444_v13 = vadd.f32 1e-06, %v1442_v11 }
 0x956   : > { %v1446_v15 = vmul.f32 %v2018_v12, %v1443_v9  ;;  %vm1452_vm15 = vweird.f32 %v2018_v12 }
 0x957   : > { %2019 = vrsqrt.f32 %v1444_v13  ;;  %vm1453_vm2 = vmor %vm1451_vm0, %vm1452_vm15  ;;  %vm1461_vm4 = vweird.f32 %v1444_v13 }
 0x958   : > { %v1447_v16 = vmul.f32 %v2018_v12, %v1446_v15 }
 0x95a   : > { %v1448_v17 = vmul.f32 0.5, %v1447_v16 }
 0x95c   : > { %v1449_v18 = vsub.f32 1.5, %v1448_v17 }
 0x95d   : > { %v2020_v19 = vpop.eup %2019 }
 0x95e   : > { %v1450_v20 = vmul.f32 %v2018_v12, %v1449_v18  ;;  %v1456_v21 = vmul.f32 %v2020_v19, %v1444_v13  ;;  %vm1462_vm3 = vweird.f32 %v2020_v19 }
 0x95f   : > { %vm1463_vm5 = vmor %vm1461_vm4, %vm1462_vm3 }
 0x960   : > { %v1454_v6 = vsel %vm1453_vm2, %v2018_v12, %v1450_v20  ;;  %v1457_v23 = vmul.f32 %v2020_v19, %v1456_v21 }
 0x961   : > { %v1465_v25 = vmul.f32 %v1454_v6, %v1431_v62 }
 0x962   : > { %v1458_v26 = vmul.f32 0.5, %v1457_v23 }
 0x963   : > { %v1470_v27 = vmul.f32 %v1989_v22, %v1465_v25 }
 0x964   : > { %v1459_v28 = vsub.f32 1.5, %v1458_v26 }
 0x965   : > { %v1475_v29 = vadd.f32 %v1990_v24, %v1470_v27 }
 0x966   : > { %v1460_v30 = vmul.f32 %v2020_v19, %v1459_v28 }
 0x967   : > { %1477 = vst.msk [vmem:[#allocation2] sm:$0xff] %vm911_vm1, %v1475_v29 }
 0x968   : > { %v1464_v31 = vsel %vm1463_vm5, %v2020_v19, %v1460_v30 }
 0x969   : > { %v1466_v32 = vmul.f32 %v1464_v31, %v1432_v3 }
 0x96b   : > { %v1471_v33 = vmul.f32 %v1989_v22, %v1466_v32  ;;  %1482 = sbr.rel (%p1873_p7) target bundleno = 3094 (0xc16), region = 124 }
 0x96d   : > { %v1476_v34 = vadd.f32 %v1990_v24, %v1471_v33 }
 0x96f   : > { %1478 = vst.msk [vmem:[#allocation2 + $0x8] sm:$0xff] %vm911_vm1, %v1476_v34 }
 0x970   : > { %v1509_v35 = vld [vmem:[%s2830_s14 + $0x18] sm:$0xff]  ;;  %v1508_v36 = vld [vmem:[%s2830_s14 + $0x10] sm:$0xff]  ;;  %v1483_v37 = vsel %vm911_vm1, %v1475_v29, 0.0  ;;  %v1490_v38 = vsel %vm911_vm1, %v1476_v34, 0.0  ;;  %v2302_v41 = vmov 8.0   ;;  %v1507_v42 = vld [vmem:[%s2830_s14 + $0x8] sm:$0xff]  ;;  %v1586_v20 = vlaneseq }
 0x971   : > { %1532 = vmatpush.msra.mxu0 %v1509_v35  ;;  %v1484_v39 = vrot.slane %v1483_v37, 4  ;;  %v1491_v40 = vrot.slane %v1490_v38, 4  ;;  %2025 = vrcp.f32 %v2302_v41  ;;  %v1506_v44 = vld [vmem:[%s2830_s14] sm:$0xff]  ;;  %vm1516_vm7 = vcmask 1041409   ;;  %v1544_v62 = vld [vmem:[%s2872_s25 + $0x18] sm:$0xff]  ;;  %v1543_v63 = vld [vmem:[%s2872_s25 + $0x10] sm:$0xff] }
 0x972   : > { %1564 = vmatpush.msra.mxu1 %v1544_v62  ;;  %v1542_v0 = vld [vmem:[%s2872_s25 + $0x8] sm:$0xff]  ;;  %v1541_v1 = vld [vmem:[%s2872_s25] sm:$0xff]  ;;  %vm1572_vm8 = vcmask 17408   ;;  %v2303_v12 = vmov 0   ;;  %v1587_v21 = vand.u32 127, %v1586_v20  ;;  %v2304_v25 = vmov 0.0  }
 0x973   : > { %1533 = vmatpush.msra.mxu0 %v1508_v36  ;;  %v1485_v43 = vadd.f32 %v1484_v39, %v1483_v37  ;;  %v1492_v14 = vadd.f32 %v1491_v40, %v1490_v38  ;;  %v2023_v2 = vld [vmem:[%s2873_s15] ss:$0 sm:$0xff]  ;;  %2021 = vset.pattern.permute.xlu1 %v2303_v12  ;;  %vm1600_vm9 = vcmask 1041408   ;;  %vm1609_vm10 = vcmask 0  }
 0x974   : > { %1565 = vmatpush.msra.mxu1 %v1543_v63  ;;  %v2024_v7 = vld [vmem:[%s2874_s7] ss:$0 sm:$0xff]  ;;  %2022 = vset.pattern.permute.xlu0 %v2303_v12 }
 0x975   : > { %1534 = vmatpush.msra.mxu0 %v1507_v42  ;;  %v1486_v45 = vrot.slane %v1485_v43, 2  ;;  %v1493_v46 = vrot.slane %v1492_v14, 2  ;;  %v1588_v11 = vld [vmem:[%s2875_s0] sm:$0x3] }
 0x976   : > { %1566 = vmatpush.msra.mxu1 %v1542_v0  ;;  %1590 = vperm.xlu1 %2021, %v1588_v11  }
 0x977   : > { %v2026_v47 = vpop.eup %2025  ;;  %1535 = vmatpush.msra.mxu0 %v1506_v44  ;;  %v1487_v48 = vadd.f32 %v1486_v45, %v1485_v43  ;;  %v1494_v49 = vadd.f32 %v1493_v46, %v1492_v14 }
 0x978   : > { %v1498_v50 = vmul.f32 8.0, %v2026_v47  ;;  %vm1502_vm6 = vweird.f32 %v2026_v47  ;;  %1567 = vmatpush.msra.mxu1 %v1541_v1 }
 0x979   : > { %v1488_v51 = vrot.slane %v1487_v48, 1  ;;  %v1495_v52 = vrot.slane %v1494_v49, 1 }
 0x97a   : > { %v1499_v53 = vsub.f32 1.0, %v1498_v50 }
 0x97b   : > { %v1489_v55 = vadd.f32 %v1488_v51, %v1487_v48  ;;  %v1496_v56 = vadd.f32 %v1495_v52, %v1494_v49 }
 0x97c   : > { %v1500_v54 = vmul.f32 %v2026_v47, %v1499_v53 }
 0x97e   : > { %v1501_v57 = vadd.f32 %v2026_v47, %v1500_v54 }
 0x980   : > { %v1503_v58 = vsel %vm1502_vm6, %v2026_v47, %v1501_v57 }
 0x981   : > { %v1504_v59 = vmul.f32 %v1503_v58, %v1489_v55  ;;  %v1505_v60 = vmul.f32 %v1503_v58, %v1496_v56 }
 0x983   : > { %v1517_v61 = vsel %vm1516_vm7, %v1505_v60, %v1504_v59 }
 0x984   : > { %1874 = vmatmul.msk.f32.vlgmr.msra.gmra.mxu0 %vm911_vm1, %v1517_v61 }
 0x9e8   : > { %v1591_v22 = vpop.permute.xlu1 %1590 }
 0xa01   : > { %v1537_v3 = vpop.f32.mrf.mxu0 }
 0xa02   : > { %v1538_v4 = vadd.f32 %v2023_v2, %v1537_v3 }
 0xa04   : > { %2027 = vtanh.f32 %v1538_v4 }
 0xa0a   : > { %v2028_v5 = vpop.eup %2027 }
 0xa0b   : > { %1875 = vmatmul.msk.f32.vlgmr.msra.gmra.mxu1 %vm911_vm1, %v2028_v5  ;;  %vm1592_vm1 = vcmp.eq.s32.totalorder %v1587_v21, %v1591_v22 }
 0xa0c   : > { %v1876_v26 = vsel %vm1592_vm1, 1.0, %v2304_v25 }
 0xa88   : > { %v1569_v8 = vpop.f32.mrf.mxu1 }
 0xa89   : > { %v1570_v9 = vadd.f32 %v2024_v7, %v1569_v8 }
 0xa8b   : > { %v1573_v10 = vsel %vm1572_vm8, %v1570_v9, -inf  ;;  %1611 = vst.msk [vmem:[#allocation14] sm:$0x3] %vm1572_vm8, %v1570_v9 }
 0xa8c   : > { %1574 = vmax.xlane.f32.xlu0 %v1573_v10 }
 0xaff   : > { %v1575_v13 = vpop.xlane.xlu0 %1574 }
 0xb00   : > { %v1576_v15 = vsub.f32 %v1570_v9, %v1575_v13 }
 0xb02   : > { %v1577_v16 = vmul.f32 1.442695, %v1576_v15 }
 0xb04   : > { %2029 = vpow2.f32 %v1577_v16 }
 0xb0a   : > { %v2030_v17 = vpop.eup %2029 }
 0xb0b   : > { %v1579_v18 = vsel %vm1572_vm8, %v2030_v17, 0.0 }
 0xb0c   : > { %1580 = vadd.xlane.f32.xlu0 %v1579_v18 }
 0xb7f   : > { %v1581_v19 = vpop.xlane.xlu0 %1580 }
 0xb80   : > { %2031 = vlog2.f32 %v1581_v19 }
 0xb86   : > { %v2032_v6 = vpop.eup %2031 }
 0xb87   : > { %v1583_v23 = vmul.f32 0.6931472, %v2032_v6 }
 0xb89   : > { %v1584_v24 = vadd.f32 %v1583_v23, %v1575_v13 }
 0xb8b   : > { %v1585_v27 = vsub.f32 %v1570_v9, %v1584_v24 }
 0xb8d   : > { %v1595_v28 = vmul.f32 %v1876_v26, %v1585_v27 }
 0xb8f   : > { %v1596_v29 = vsel %vm1572_vm8, %v1595_v28, 0.0 }
 0xb90   : > { %1597 = vadd.xlane.f32.xlu1 %v1596_v29 }
 0xc03   : > { %v1598_v30 = vpop.xlane.xlu1 %1597 }
 0xc04   : > { %v1599_v31 = vsub.f32 0.0, %v1598_v30 }
 0xc06   : > { %v1601_v32 = vsel %vm1600_vm9, %v1599_v31, 0.0 }
 0xc07   : > { %v1602_v33 = vrot.slane %v1601_v32, 4 }
 0xc09   : > { %v1603_v34 = vadd.f32 %v1602_v33, %v1601_v32 }
 0xc0b   : > { %v1604_v35 = vrot.slane %v1603_v34, 2 }
 0xc0d   : > { %v1605_v36 = vadd.f32 %v1604_v35, %v1603_v34 }
 0xc0f   : > { %v1606_v37 = vrot.slane %v1605_v36, 1 }
 0xc11   : > { %v1607_v38 = vadd.f32 %v1606_v37, %v1605_v36 }
 0xc13   : > { %v1608_v39 = vmul.f32 0.5, %v1607_v38 }
 0xc15   : > { %1610 = vst.msk [vmem:[#allocation13] sm:$0x1] %vm1609_vm10, %v1608_v39 }
 0xc16 PF: > { %p1931_p10 = scmp.eq.s32.totalorder %s2501_s4, 1  ;;  %s2305_s1 = smov [#allocation13]  }
 0xc17   : > { %s1618_s2 = sshll.u32 %s2305_s1, 4  ;;  %s2876_s21 = sld [smem:[#allocation35_spill]]  ;;  %s1619_s2 = int_to_ptr.vmem [resolvable:$true] %s1618_s2 }
 0xc18   : > { %s2877_s23 = sld [smem:[#allocation36_spill]]  ;;  %s2306_s29 = smov [#allocation14]  }
 0xc19   : > { %s1630_s3 = sshll.u32 %s2306_s29, 4  ;;  %s1631_s3 = int_to_ptr.vmem [resolvable:$true] %s1630_s3 }
 0xc1d   : > { %s1620_s26 = sshll.u32 %s2876_s21, 4  ;;  %s1621_s26 = int_to_ptr.hbm [resolvable:$true] %s1620_s26 }
 0xc1e   : > { %1904 = dma.vmem_to_hbm [thread:$0]  (%p1931_p10), %s1619_s2, 16, %s1621_s26, [#allocation6]  }
 0xc1f   : > { %s1632_s5 = sshll.u32 %s2877_s23, 4  ;;  %s1633_s5 = int_to_ptr.hbm [resolvable:$true] %s1632_s5 }
 0xc20   : > { %1906 = dma.vmem_to_hbm [thread:$0]  (%p1931_p10), %s1631_s3, 32, %s1633_s5, [#allocation15]  }
 0xc21   : > { %2268 = dma.done.wait (%p1931_p10), [#allocation6], 16  }
 0xc22   : > { %2270 = vsyncadd (%p1931_p10), [#allocation6], 4294967280 }
 0xc23   : > { %2272 = dma.done.wait (%p1931_p10), [#allocation15], 32  }
 0xc24   : > { %2274 = vsyncadd (%p1931_p10), [#allocation15], 4294967264 }
 0xc25 PF: > { %s2878_s24 = sld [smem:[#allocation22_spill]]  ;;  %s2881_s1 = smov %s2281_s22 }
 0xc26   : > { %s2879_s27 = sld [smem:[#allocation21_spill]] }
 0xc27   : > { %s2880_s23 = sld [smem:[#allocation23_spill]] }
 0xc2b   : > { %p37_p13 = scmp.ge.s32.totalorder %s2878_s24, 4  }
 0xc2c   : > { %s2882_s22 = smov %s2879_s27 }
 0xc2d   :  { %39 = sbr.rel (!%p37_p13) target bundleno = 22 (0x16), region = 213 }
 0xc32   :  { %1651 = vsyncpa [#allocation5], 1 }
 0xc33   :  { %1653 = vsyncpa [#allocation5 + $0x1], 1 }
 0xc34   :  { %1654 = vsyncpa [#allocation8], 1 }
 0xc35   :  { %1656 = vsyncpa [#allocation8 + $0x1], 1 }
 0xc36   :  { %1657 = vsyncpa [#allocation11], 1 }
 0xc37   :  { %1659 = vsyncpa [#allocation11 + $0x1], 1 }
 0xc38   :  { %1660 = vsyncpa [#allocation6], 1 }
 0xc39   :  { %1662 = vsyncpa [#allocation6 + $0x1], 1 }
 0xc3a   :  { %1663 = vsyncpa [#allocation15], 1 }

</bundles_post_ra>
